<compile_context>
chip_gen: v7x
topology: tpu7x:2x2x1
jax: 0.10.0
libtpu: 0.0.40
codegen_flags: <defaults>
</compile_context>

<pallas_src>
import jax
import jax.numpy as jnp
from jax.experimental import pallas as pl
from jax.experimental.pallas import tpu as pltpu

LATENT_DIMS = 32
HIDDEN = 400
OUT = 2058            # = 42 * 49
HIDDEN_PAD = 512      # 400 -> 4 * 128 (lane-aligned)
OUT_PAD = 2176        # 2058 -> 17 * 128 (lane-aligned)


def _round_up(x, m):
    return ((x + m - 1) // m) * m


def decoder_kernel(z_ref, w1_ref, b1_ref, w2_ref, b2_ref, o_ref):
    # layer 1: (TB, L) @ (L, 512) + (1, 512) -> ReLU   (bf16 in, f32 accumulate)
    z = z_ref[...].astype(jnp.bfloat16)
    h = jnp.dot(z, w1_ref[...], preferred_element_type=jnp.float32)
    h = jnp.maximum(h + b1_ref[...], 0.0)
    # layer 2: (TB, 512) @ (512, 2176) + (1, 2176) -> sigmoid
    y = jnp.dot(h.astype(jnp.bfloat16), w2_ref[...],
                preferred_element_type=jnp.float32)
    y = y + b2_ref[...]
    # sigmoid = 1 / (1 + exp(-y)); exp + approx reciprocal both go to the EUP slot
    o_ref[...] = pl.reciprocal(1.0 + jnp.exp(-y), approx=True).astype(o_ref.dtype)


def decoder_forward(z, w1, b1, w2, b2, *, tb=256):
    """z: (B, latent_dims) float32. Weights are the zero-padded bf16 params from
    init_params. Returns (B, 42, 49) float32."""
    B = z.shape[0]
    # Batch tile: whole (8-aligned) batch when small, otherwise `tb` rows/tile.
    TB = min(tb, max(8, _round_up(B, 8)))
    B_pad = _round_up(max(B, TB), TB)
    if B_pad != B:
        z = jnp.pad(z, ((0, B_pad - B), (0, 0)))

    out = pl.pallas_call(
        decoder_kernel,
        out_shape=jax.ShapeDtypeStruct((B_pad, OUT_PAD), jnp.float32),
        grid=(B_pad // TB,),
        in_specs=[
            pl.BlockSpec((TB, LATENT_DIMS), lambda i: (i, 0)),
            # weights/biases: same block every iteration -> resident in VMEM
            pl.BlockSpec((LATENT_DIMS, HIDDEN_PAD), lambda i: (0, 0)),
            pl.BlockSpec((1, HIDDEN_PAD), lambda i: (0, 0)),
            pl.BlockSpec((HIDDEN_PAD, OUT_PAD), lambda i: (0, 0)),
            pl.BlockSpec((1, OUT_PAD), lambda i: (0, 0)),
        ],
        out_specs=pl.BlockSpec((TB, OUT_PAD), lambda i: (i, 0)),
        compiler_params=pltpu.CompilerParams(
            dimension_semantics=("parallel",)
        ),
    )(z, w1, b1, w2, b2)

    # drop batch/feature padding, then view(-1, 42, 49)
    return out[:B, :OUT].reshape(-1, 42, 49)


def init_params(key, latent_dims=LATENT_DIMS):
    """nn.Linear-style U(-1/sqrt(fan_in), 1/sqrt(fan_in)) init, stored as
    (in, out) weights, zero-padded to lane-aligned shapes, weights in bf16."""
    k1, k2, k3, k4 = jax.random.split(key, 4)
    bound1 = 1.0 / (latent_dims ** 0.5)
    bound2 = 1.0 / (HIDDEN ** 0.5)
    w1 = jax.random.uniform(k1, (latent_dims, HIDDEN), jnp.float32, -bound1, bound1)
    b1 = jax.random.uniform(k2, (1, HIDDEN), jnp.float32, -bound1, bound1)
    w2 = jax.random.uniform(k3, (HIDDEN, OUT), jnp.float32, -bound2, bound2)
    b2 = jax.random.uniform(k4, (1, OUT), jnp.float32, -bound2, bound2)
    # zero padding is numerically exact: padded hidden units have zero weight
    # and zero bias (ReLU(0)=0), and padded w2 rows are zero.
    w1p = jnp.zeros((latent_dims, HIDDEN_PAD), jnp.bfloat16)
    w1p = w1p.at[:, :HIDDEN].set(w1.astype(jnp.bfloat16))
    b1p = jnp.zeros((1, HIDDEN_PAD), jnp.float32).at[:, :HIDDEN].set(b1)
    w2p = jnp.zeros((HIDDEN_PAD, OUT_PAD), jnp.bfloat16)
    w2p = w2p.at[:HIDDEN, :OUT].set(w2.astype(jnp.bfloat16))
    b2p = jnp.zeros((1, OUT_PAD), jnp.float32).at[:, :OUT].set(b2)
    return w1p, b1p, w2p, b2p


if __name__ == "__main__":
    key = jax.random.PRNGKey(0)
    kz, kp = jax.random.split(key)

    B = 8
    z = jax.random.normal(kz, (B, LATENT_DIMS), jnp.float32)
    w1, b1, w2, b2 = init_params(kp)

    out = decoder_forward(z, w1, b1, w2, b2)
    out = jax.block_until_ready(out)

    # reference check in plain JAX (same bf16 weights, f32 accumulation)
    zb = z.astype(jnp.bfloat16)
    h_ref = jnp.maximum(
        jnp.dot(zb, w1, preferred_element_type=jnp.float32) + b1, 0.0)
    y_ref = jax.nn.sigmoid(
        jnp.dot(h_ref.astype(jnp.bfloat16), w2,
                preferred_element_type=jnp.float32) + b2)
    ref = y_ref[:, :OUT].reshape(-1, 42, 49)

    assert out.shape == (B, 42, 49), out.shape
    assert jnp.allclose(out, ref, atol=1e-2, rtol=1e-2), float(
        jnp.max(jnp.abs(out - ref)))

    print("KERNEL_OK")
</pallas_src>

<mosaic_0001>
module attributes {stable_mosaic.version = 11 : i64} {
  func.func @decoder_kernel(%arg0: i32, %arg1: memref<8x32xf32, #tpu.memory_space<vmem>>, %arg2: memref<32x512xbf16, #tpu.memory_space<vmem>>, %arg3: memref<1x512xf32, #tpu.memory_space<vmem>>, %arg4: memref<512x2176xbf16, #tpu.memory_space<vmem>>, %arg5: memref<1x2176xf32, #tpu.memory_space<vmem>>, %arg6: memref<8x2176xf32, #tpu.memory_space<vmem>>) attributes {dimension_semantics = [#tpu.dimension_semantics<parallel>], iteration_bounds = array<i64: 1>, scalar_prefetch = 0 : i64, scratch_operands = 0 : i64, tpu.core_type = #tpu.core_type<tc>, window_params = [{transform_indices = @transform_0, window_bounds = array<i64: 8, 32>}, {pipeline_mode = #tpu.pipeline_mode<synchronous>, transform_indices = @transform_1, window_bounds = array<i64: 32, 512>}, {pipeline_mode = #tpu.pipeline_mode<synchronous>, transform_indices = @transform_2, window_bounds = array<i64: 1, 512>}, {pipeline_mode = #tpu.pipeline_mode<synchronous>, transform_indices = @transform_3, window_bounds = array<i64: 512, 2176>}, {pipeline_mode = #tpu.pipeline_mode<synchronous>, transform_indices = @transform_4, window_bounds = array<i64: 1, 2176>}, {transform_indices = @transform_5, window_bounds = array<i64: 8, 2176>}]} {
    %c0 = arith.constant 0 : index
    %c0_0 = arith.constant 0 : index
    %0 = vector.load %arg1[%c0, %c0_0] : memref<8x32xf32, #tpu.memory_space<vmem>>, vector<8x32xf32>
    %1 = arith.truncf %0 : vector<8x32xf32> to vector<8x32xbf16>
    %c0_1 = arith.constant 0 : index
    %c0_2 = arith.constant 0 : index
    %2 = vector.load %arg2[%c0_1, %c0_2] : memref<32x512xbf16, #tpu.memory_space<vmem>>, vector<32x512xbf16>
    %cst = arith.constant dense<0.000000e+00> : vector<8x512xf32>
    %3 = tpu.matmul %1, %2, %cst {dimension_numbers = #tpu.dot_dimension_numbers<[1], [0], [0], [1], [0, 0, 1, 1], [], []>} : vector<8x32xbf16>, vector<32x512xbf16>, vector<8x512xf32> -> vector<8x512xf32>
    %c0_3 = arith.constant 0 : index
    %c0_4 = arith.constant 0 : index
    %4 = vector.load %arg3[%c0_3, %c0_4] : memref<1x512xf32, #tpu.memory_space<vmem>>, vector<1x512xf32>
    %5 = vector.broadcast %4 : vector<1x512xf32> to vector<8x512xf32>
    %6 = arith.addf %3, %5 : vector<8x512xf32>
    %cst_5 = arith.constant 0.000000e+00 : f32
    %7 = vector.broadcast %cst_5 : f32 to vector<8x512xf32>
    %8 = arith.maximumf %6, %7 : vector<8x512xf32>
    %9 = arith.truncf %8 : vector<8x512xf32> to vector<8x512xbf16>
    %c0_6 = arith.constant 0 : index
    %c0_7 = arith.constant 0 : index
    %10 = vector.load %arg4[%c0_6, %c0_7] : memref<512x2176xbf16, #tpu.memory_space<vmem>>, vector<512x2176xbf16>
    %cst_8 = arith.constant dense<0.000000e+00> : vector<8x2176xf32>
    %11 = tpu.matmul %9, %10, %cst_8 {dimension_numbers = #tpu.dot_dimension_numbers<[1], [0], [0], [1], [0, 0, 1, 1], [], []>} : vector<8x512xbf16>, vector<512x2176xbf16>, vector<8x2176xf32> -> vector<8x2176xf32>
    %c0_9 = arith.constant 0 : index
    %c0_10 = arith.constant 0 : index
    %12 = vector.load %arg5[%c0_9, %c0_10] : memref<1x2176xf32, #tpu.memory_space<vmem>>, vector<1x2176xf32>
    %13 = vector.broadcast %12 : vector<1x2176xf32> to vector<8x2176xf32>
    %14 = arith.addf %11, %13 : vector<8x2176xf32>
    %cst_11 = arith.constant 0.000000e+00 : f32
    %15 = vector.broadcast %cst_11 : f32 to vector<8x2176xf32>
    %16 = arith.subf %15, %14 : vector<8x2176xf32>
    %17 = math.exp %16 : vector<8x2176xf32>
    %cst_12 = arith.constant 1.000000e+00 : f32
    %18 = vector.broadcast %cst_12 : f32 to vector<8x2176xf32>
    %19 = arith.addf %18, %17 : vector<8x2176xf32>
    %20 = tpu.reciprocal %19 {approx = true} : vector<8x2176xf32> -> vector<8x2176xf32>
    %c0_13 = arith.constant 0 : index
    %c0_14 = arith.constant 0 : index
    %21 = vector.load %arg6[%c0_13, %c0_14] : memref<8x2176xf32, #tpu.memory_space<vmem>>, vector<8x2176xf32>
    tpu.vector_store %arg6[%c0_13, %c0_14], %20 {strides = array<i32>} : memref<8x2176xf32, #tpu.memory_space<vmem>>, vector<8x2176xf32>,
    return
  }
  func.func @transform_0(%arg0: i32) -> (i32, i32) {
    %c0_i32 = arith.constant 0 : i32
    %c0_i32_0 = arith.constant 0 : i32
    return %arg0, %c0_i32 : i32, i32
  }
  func.func @transform_1(%arg0: i32) -> (i32, i32) {
    %c0_i32 = arith.constant 0 : i32
    %c0_i32_0 = arith.constant 0 : i32
    %c0_i32_1 = arith.constant 0 : i32
    return %c0_i32, %c0_i32_0 : i32, i32
  }
  func.func @transform_2(%arg0: i32) -> (i32, i32) {
    %c0_i32 = arith.constant 0 : i32
    %c0_i32_0 = arith.constant 0 : i32
    %c0_i32_1 = arith.constant 0 : i32
    return %c0_i32, %c0_i32_0 : i32, i32
  }
  func.func @transform_3(%arg0: i32) -> (i32, i32) {
    %c0_i32 = arith.constant 0 : i32
    %c0_i32_0 = arith.constant 0 : i32
    %c0_i32_1 = arith.constant 0 : i32
    return %c0_i32, %c0_i32_0 : i32, i32
  }
  func.func @transform_4(%arg0: i32) -> (i32, i32) {
    %c0_i32 = arith.constant 0 : i32
    %c0_i32_0 = arith.constant 0 : i32
    %c0_i32_1 = arith.constant 0 : i32
    return %c0_i32, %c0_i32_0 : i32, i32
  }
  func.func @transform_5(%arg0: i32) -> (i32, i32) {
    %c0_i32 = arith.constant 0 : i32
    %c0_i32_0 = arith.constant 0 : i32
    return %arg0, %c0_i32 : i32, i32
  }
}

</mosaic_0001>

<bundles_post_ra>
// kernel: tpu_custom_call.1
= control target key start
LH: loop header
LB: loop body
LE: loop exit
PB: predicated region body
PF: predicated region fallthrough
CT: control target
= control target key end

     0   :  { %10 = vsyncpa [#allocation3], 0  ;;  %s6424_s0 = inlined_call_operand.hbm [shape: f32[8,32], index: 0, kind: input, shape index: {}]   ;;  %s6425_s1 = inlined_call_operand.hbm [shape: bf16[32,512], index: 1, kind: input, shape index: {}]   ;;  %s6426_s2 = inlined_call_operand.hbm [shape: f32[1,512], index: 2, kind: input, shape index: {}]   ;;  %s6427_s3 = inlined_call_operand.hbm [shape: bf16[512,2176], index: 3, kind: input, shape index: {}]   ;;  %s6428_s4 = inlined_call_operand.hbm [shape: f32[1,2176], index: 4, kind: input, shape index: {}]   ;;  %s6429_s5 = inlined_call_operand.hbm [shape: f32[8,2176], index: 5, kind: output, shape index: {}]  }
   0x1   :  { %11 = vsyncpa [#allocation6], 0 }
   0x2   :  { %12 = vsyncpa [#allocation9], 0 }
   0x3   :  { %13 = vsyncpa [#allocation4], 0  ;;  %s6202_s18 = smov [#allocation5]   ;;  %s6062_s22 = scalar_lea.hbm %s6425_s1, 1024 }
   0x4   :  { %s29_s19 = sshll.u32 %s6202_s18, 4  ;;  %p6063_p0 = scmp.ne.s32.totalorder %s6425_s1, %s6062_s22  ;;  %s30_s19 = int_to_ptr.vmem [resolvable:$true] %s29_s19 }
   0x5   :  { %p6066_p1 = scmp.lt.u32.totalorder %s6062_s22, %s6425_s1 }
   0x7   :  { %p6068_p2 = pnand %p6066_p1, %p6063_p0 }
   0x9   :  { %6071 = shalt.err (!%p6068_p2)
}
   0xa   :  { %s6072_s27 = scalar_lea.vmem %s30_s19, 1024  ;;  %p6077_p4 = scmp.lt.s32.totalorder %s30_s19, %s30_s19 }
   0xb   :  { %p6073_p3 = scmp.ne.s32.totalorder %s30_s19, %s6072_s27  ;;  %p6078_p5 = scmp.lt.s32.totalorder %s6072_s27, %s6072_s27 }
   0xd   :  { %p6079_p6 = por %p6078_p5, %p6077_p4 }
   0xf   :  { %p6080_p7 = pnand %p6079_p6, %p6073_p3 }
  0x11   :  { %6083 = shalt.err (!%p6080_p7)
}
  0x12   :  { %s6203_s28 = smov 256   ;;  %s6204_s29 = smov 16  }
  0x13   :  { %35 = dma.hbm_to_vmem [thread:$0]  %s6425_s1, 1024, %s30_s19, [#allocation6], %s6203_s28, %s6203_s28, %s6204_s29  }
  0x14   :  { %s6205_s7 = smov [#allocation8]   ;;  %s6084_s11 = scalar_lea.hbm %s6427_s3, 69632 }
  0x15   :  { %s51_s8 = sshll.u32 %s6205_s7, 4  ;;  %p6085_p8 = scmp.ne.s32.totalorder %s6427_s3, %s6084_s11  ;;  %s52_s8 = int_to_ptr.vmem [resolvable:$true] %s51_s8 }
  0x16   :  { %p6088_p9 = scmp.lt.u32.totalorder %s6084_s11, %s6427_s3 }
  0x18   :  { %p6090_p10 = pnand %p6088_p9, %p6085_p8 }
  0x1a   :  { %6093 = shalt.err (!%p6090_p10)
}
  0x1b   :  { %s6094_s16 = scalar_lea.vmem %s52_s8, 69632  ;;  %p6099_p12 = scmp.lt.s32.totalorder %s52_s8, %s52_s8 }
  0x1c   :  { %p6095_p11 = scmp.ne.s32.totalorder %s52_s8, %s6094_s16  ;;  %p6100_p13 = scmp.lt.s32.totalorder %s6094_s16, %s6094_s16 }
  0x1e   :  { %p6101_p0 = por %p6100_p13, %p6099_p12 }
  0x20   :  { %p6102_p1 = pnand %p6101_p0, %p6095_p11 }
  0x22   :  { %6105 = shalt.err (!%p6102_p1)
}
  0x23   :  { %s6206_s1 = smov 1088   ;;  %s6207_s17 = smov 68  }
  0x24   :  { %57 = dma.hbm_to_vmem [thread:$0]  %s6427_s3, 69632, %s52_s8, [#allocation9], %s6206_s1, %s6206_s1, %s6207_s17  }
  0x25   :  { %s6208_s20 = smov [#allocation2]   ;;  %s6209_s22 = smov [#allocation7]  }
  0x26   :  { %s20_s21 = sshll.u32 %s6208_s20, 4  ;;  %s42_s23 = sshll.u32 %s6209_s22, 4  ;;  %s21_s21 = int_to_ptr.vmem [resolvable:$true] %s20_s21  ;;  %s43_s23 = int_to_ptr.vmem [resolvable:$true] %s42_s23 }
  0x27   :  { %s6106_s26 = scalar_lea.hbm %s6424_s0, 128 }
  0x28   :  { %p6107_p2 = scmp.ne.s32.totalorder %s6424_s0, %s6106_s26  ;;  %p6110_p3 = scmp.lt.u32.totalorder %s6106_s26, %s6424_s0 }
  0x2a   :  { %p6112_p4 = pnand %p6110_p3, %p6107_p2 }
  0x2c   :  { %6115 = shalt.err (!%p6112_p4)
}
  0x2d   :  { %s6116_s3 = scalar_lea.vmem %s21_s21, 128  ;;  %p6121_p6 = scmp.lt.s32.totalorder %s21_s21, %s21_s21 }
  0x2e   :  { %p6117_p5 = scmp.ne.s32.totalorder %s21_s21, %s6116_s3  ;;  %p6122_p7 = scmp.lt.s32.totalorder %s6116_s3, %s6116_s3 }
  0x30   :  { %p6123_p8 = por %p6122_p7, %p6121_p6 }
  0x32   :  { %p6124_p9 = pnand %p6123_p8, %p6117_p5 }
  0x34   :  { %6127 = shalt.err (!%p6124_p9)
}
  0x35   :  { %23 = dma.hbm_to_vmem [thread:$0]  %s6424_s0, 128, %s21_s21, [#allocation3]  }
  0x36   :  { %s6128_s10 = scalar_lea.hbm %s6426_s2, 64 }
  0x37   :  { %p6129_p10 = scmp.ne.s32.totalorder %s6426_s2, %s6128_s10  ;;  %p6132_p11 = scmp.lt.u32.totalorder %s6128_s10, %s6426_s2 }
  0x39   :  { %p6134_p12 = pnand %p6132_p11, %p6129_p10 }
  0x3b   :  { %6137 = shalt.err (!%p6134_p12)
}
  0x3c   :  { %s6138_s15 = scalar_lea.vmem %s43_s23, 64  ;;  %p6143_p0 = scmp.lt.s32.totalorder %s43_s23, %s43_s23 }
  0x3d   :  { %p6139_p13 = scmp.ne.s32.totalorder %s43_s23, %s6138_s15  ;;  %p6144_p1 = scmp.lt.s32.totalorder %s6138_s15, %s6138_s15 }
  0x3f   :  { %p6145_p2 = por %p6144_p1, %p6143_p0 }
  0x41   :  { %p6146_p3 = pnand %p6145_p2, %p6139_p13 }
  0x43   :  { %6149 = shalt.err (!%p6146_p3)
}
  0x44   :  { %45 = dma.hbm_to_vmem [thread:$0]  %s6426_s2, 64, %s43_s23, [#allocation6]  }
  0x45   :  { %s6210_s1 = smov [#allocation10]   ;;  %s6150_s20 = scalar_lea.hbm %s6428_s4, 272 }
  0x46   :  { %s64_s17 = sshll.u32 %s6210_s1, 4  ;;  %p6151_p4 = scmp.ne.s32.totalorder %s6428_s4, %s6150_s20  ;;  %s65_s17 = int_to_ptr.vmem [resolvable:$true] %s64_s17 }
  0x47   :  { %p6154_p5 = scmp.lt.u32.totalorder %s6150_s20, %s6428_s4 }
  0x49   :  { %p6156_p6 = pnand %p6154_p5, %p6151_p4 }
  0x4b   :  { %6159 = shalt.err (!%p6156_p6)
}
  0x4c   :  { %s6160_s26 = scalar_lea.vmem %s65_s17, 272  ;;  %s6164_s2 = scalar_lea.vmem %s65_s17, 288 }
  0x4d   :  { %p6161_p7 = scmp.ne.s32.totalorder %s65_s17, %s6160_s26  ;;  %p6165_p8 = scmp.lt.s32.totalorder %s65_s17, %s65_s17 }
  0x4e   :  { %p6166_p9 = scmp.lt.s32.totalorder %s6164_s2, %s6160_s26 }
  0x50   :  { %p6167_p10 = por %p6166_p9, %p6165_p8 }
  0x52   :  { %p6168_p11 = pnand %p6167_p10, %p6161_p7 }
  0x54   :  { %6171 = shalt.err (!%p6168_p11)
}
  0x55   :  { %67 = dma.hbm_to_vmem [thread:$0]  %s6428_s4, 272, %s65_s17, [#allocation9]  }
  0x56   :  { %6194 = dma.done.wait [#allocation3], 128  }
  0x57   :  { %6195 = vsyncadd [#allocation3], 4294967168 }
  0x58   :  { %6196 = dma.done.wait [#allocation6], 1088  }
  0x59   :  { %6197 = vsyncadd [#allocation6], 4294966208 }
  0x5a   :  { %6198 = dma.done.wait [#allocation9], 69904  }
  0x5b   :  { %6199 = vsyncadd [#allocation9], 4294897392  ;;  %v6211_v0 = vmov 0   ;;  %v5182_v1 = vld [vmem:[#allocation5 + $0x4] ss:$16 sps:$4 sm:$0xff]   ;;  %v84_v5 = vld [vmem:[#allocation2] sm:$0xff] }
  0x5c   :  { %192 = vmatprep.mubr.bf16.mxu0 %v6211_v0  ;;  %233 = vmatprep.mubr.bf16.mxu1 %v6211_v0  ;;  %v5184_v2 = vld [vmem:[#allocation5] ss:$16 sps:$4 sm:$0xff]   ;;  %v5185_v3 = vld [vmem:[#allocation5 + $0x24] ss:$16 sps:$4 sm:$0xff]   ;;  %v5188_v6 = vld [vmem:[#allocation5 + $0xc] ss:$16 sps:$4 sm:$0xff]   ;;  %v85_v9 = vpack.c.bf16 %v84_v5, %v84_v5 }
  0x5d   :  { %160 = vmatprep.subr.bf16.mxu0 %v5182_v1  ;;  %v5187_v4 = vld [vmem:[#allocation5 + $0x20] ss:$16 sps:$4 sm:$0xff]   ;;  %v5190_v7 = vld [vmem:[#allocation5 + $0x8] ss:$16 sps:$4 sm:$0xff]   ;;  %201 = vmatprep.subr.bf16.mxu1 %v5188_v6  ;;  %v5191_v8 = vld [vmem:[#allocation5 + $0x2c] ss:$16 sps:$4 sm:$0xff]  }
  0x5e   :  { %161 = vmatpush1.bf16.msra.mxu0 %v5184_v2  ;;  %202 = vmatpush1.bf16.msra.mxu1 %v5190_v7  ;;  %v5193_v10 = vld [vmem:[#allocation5 + $0x28] ss:$16 sps:$4 sm:$0xff]   ;;  %vm156_vm0 = vcmask 261120   ;;  %v5199_v13 = vld [vmem:[#allocation8 + $0xc] ss:$68 sps:$4 sm:$0xff]   ;;  %s6212_s4 = smov [#allocation11]  }
  0x5f   :  { %162 = vmatprep.subr.bf16.mxu0 %v5185_v3  ;;  %v5196_v11 = vld [vmem:[#allocation8 + $0x4] ss:$68 sps:$4 sm:$0xff]   ;;  %203 = vmatprep.subr.bf16.mxu1 %v5191_v8  ;;  %v5202_v14 = vld [vmem:[#allocation8 + $0x8c] ss:$68 sps:$4 sm:$0xff]   ;;  %v5205_v17 = vld [vmem:[#allocation8 + $0x94] ss:$68 sps:$4 sm:$0xff]  }
  0x60   :  { %v5194_v12 = vld [vmem:[#allocation8] ss:$68 sps:$4 sm:$0xff]   ;;  %v5197_v15 = vld [vmem:[#allocation8 + $0x8] ss:$68 sps:$4 sm:$0xff]   ;;  %v5208_v18 = vld [vmem:[#allocation8 + $0x114] ss:$68 sps:$4 sm:$0xff]  }
  0x61   :  { %v5200_v16 = vld [vmem:[#allocation8 + $0x88] ss:$68 sps:$4 sm:$0xff]   ;;  %v5203_v19 = vld [vmem:[#allocation8 + $0x90] ss:$68 sps:$4 sm:$0xff]   ;;  %v5211_v21 = vld [vmem:[#allocation8 + $0x11c] ss:$68 sps:$4 sm:$0xff]  }
  0x62   :  { %163 = vmatpush1.bf16.msra.mxu0 %v5187_v4  ;;  %204 = vmatpush1.bf16.msra.mxu1 %v5193_v10  ;;  %v5206_v20 = vld [vmem:[#allocation8 + $0x110] ss:$68 sps:$4 sm:$0xff]   ;;  %v5214_v22 = vld [vmem:[#allocation8 + $0x19c] ss:$68 sps:$4 sm:$0xff]   ;;  %v5217_v25 = vld [vmem:[#allocation8 + $0x1a4] ss:$68 sps:$4 sm:$0xff]  }
  0x63   :  { %3669 = vmatprep.subr.bf16.mxu0 %v5196_v11  ;;  %3751 = vmatprep.subr.bf16.mxu1 %v5199_v13  ;;  %v5209_v23 = vld [vmem:[#allocation8 + $0x118] ss:$68 sps:$4 sm:$0xff]   ;;  %v5220_v26 = vld [vmem:[#allocation8 + $0x224] ss:$68 sps:$4 sm:$0xff]   ;;  %v5223_v29 = vld [vmem:[#allocation8 + $0x22c] ss:$68 sps:$4 sm:$0xff]   ;;  %v96_v13 = vlaneseq }
  0x64   :  { %v5212_v24 = vld [vmem:[#allocation8 + $0x198] ss:$68 sps:$4 sm:$0xff]   ;;  %v5215_v27 = vld [vmem:[#allocation8 + $0x1a0] ss:$68 sps:$4 sm:$0xff]   ;;  %v5226_v30 = vld [vmem:[#allocation8 + $0x2ac] ss:$68 sps:$4 sm:$0xff]  }
  0x65   :  { %4532 = vmatmul.mubr.msk.bf16.vlgmr.msra.gmra.mrb[0].mxu0 %vm156_vm0, %v85_v9  ;;  %4533 = vmatmul.mubr.msk.bf16.vlgmr.msra.gmra.mrb[0].mxu1 %vm156_vm0, %v85_v9  ;;  %v5218_v28 = vld [vmem:[#allocation8 + $0x220] ss:$68 sps:$4 sm:$0xff]   ;;  %v5221_v31 = vld [vmem:[#allocation8 + $0x228] ss:$68 sps:$4 sm:$0xff]   ;;  %v5229_v33 = vld [vmem:[#allocation8 + $0x2b4] ss:$68 sps:$4 sm:$0xff]  }
  0x66   :  { %3670 = vmatpush1.bf16.msra.mxu0 %v5194_v12  ;;  %3752 = vmatpush1.bf16.msra.mxu1 %v5197_v15  ;;  %v5224_v32 = vld [vmem:[#allocation8 + $0x2a8] ss:$68 sps:$4 sm:$0xff]   ;;  %v5232_v34 = vld [vmem:[#allocation8 + $0x334] ss:$68 sps:$4 sm:$0xff]   ;;  %v5235_v37 = vld [vmem:[#allocation8 + $0x33c] ss:$68 sps:$4 sm:$0xff]  }
  0x67   :  { %3671 = vmatprep.subr.bf16.mxu0 %v5202_v14  ;;  %3753 = vmatprep.subr.bf16.mxu1 %v5205_v17  ;;  %v5227_v35 = vld [vmem:[#allocation8 + $0x2b0] ss:$68 sps:$4 sm:$0xff]   ;;  %v5238_v38 = vld [vmem:[#allocation8 + $0x3bc] ss:$68 sps:$4 sm:$0xff]   ;;  %v5241_v41 = vld [vmem:[#allocation8 + $0x3c4] ss:$68 sps:$4 sm:$0xff]  }
  0x68   :  { %v5230_v36 = vld [vmem:[#allocation8 + $0x330] ss:$68 sps:$4 sm:$0xff]   ;;  %v5233_v39 = vld [vmem:[#allocation8 + $0x338] ss:$68 sps:$4 sm:$0xff]   ;;  %v5244_v42 = vld [vmem:[#allocation8 + $0x444] ss:$68 sps:$4 sm:$0xff]  }
  0x69   :  { %v5236_v40 = vld [vmem:[#allocation8 + $0x3b8] ss:$68 sps:$4 sm:$0xff]   ;;  %v5239_v43 = vld [vmem:[#allocation8 + $0x3c0] ss:$68 sps:$4 sm:$0xff]   ;;  %v5247_v45 = vld [vmem:[#allocation8 + $0x44c] ss:$68 sps:$4 sm:$0xff]  }
  0x6a   :  { %3672 = vmatpush1.bf16.msra.mxu0 %v5200_v16  ;;  %3754 = vmatpush1.bf16.msra.mxu1 %v5203_v19  ;;  %v5242_v44 = vld [vmem:[#allocation8 + $0x440] ss:$68 sps:$4 sm:$0xff]   ;;  %v5250_v46 = vld [vmem:[#allocation8 + $0x4cc] ss:$68 sps:$4 sm:$0xff]   ;;  %v5253_v49 = vld [vmem:[#allocation8 + $0x4d4] ss:$68 sps:$4 sm:$0xff]  }
  0x6b   :  { %3673 = vmatprep.subr.bf16.mxu0 %v5208_v18  ;;  %3755 = vmatprep.subr.bf16.mxu1 %v5211_v21  ;;  %v5245_v47 = vld [vmem:[#allocation8 + $0x448] ss:$68 sps:$4 sm:$0xff]   ;;  %v5256_v50 = vld [vmem:[#allocation8 + $0x554] ss:$68 sps:$4 sm:$0xff]   ;;  %v5259_v53 = vld [vmem:[#allocation8 + $0x55c] ss:$68 sps:$4 sm:$0xff]  }
  0x6c   :  { %v5248_v48 = vld [vmem:[#allocation8 + $0x4c8] ss:$68 sps:$4 sm:$0xff]   ;;  %v5251_v51 = vld [vmem:[#allocation8 + $0x4d0] ss:$68 sps:$4 sm:$0xff]   ;;  %v5262_v54 = vld [vmem:[#allocation8 + $0x5dc] ss:$68 sps:$4 sm:$0xff]  }
  0x6d   :  { %v5254_v52 = vld [vmem:[#allocation8 + $0x550] ss:$68 sps:$4 sm:$0xff]   ;;  %v5257_v55 = vld [vmem:[#allocation8 + $0x558] ss:$68 sps:$4 sm:$0xff]   ;;  %v5265_v57 = vld [vmem:[#allocation8 + $0x5e4] ss:$68 sps:$4 sm:$0xff]  }
  0x6e   :  { %3674 = vmatpush1.bf16.msra.mxu0 %v5206_v20  ;;  %3756 = vmatpush1.bf16.msra.mxu1 %v5209_v23  ;;  %v5260_v56 = vld [vmem:[#allocation8 + $0x5d8] ss:$68 sps:$4 sm:$0xff]   ;;  %v5268_v58 = vld [vmem:[#allocation8 + $0x664] ss:$68 sps:$4 sm:$0xff]   ;;  %v5271_v61 = vld [vmem:[#allocation8 + $0x66c] ss:$68 sps:$4 sm:$0xff]  }
  0x6f   :  { %3675 = vmatprep.subr.bf16.mxu0 %v5214_v22  ;;  %3757 = vmatprep.subr.bf16.mxu1 %v5217_v25  ;;  %v5263_v59 = vld [vmem:[#allocation8 + $0x5e0] ss:$68 sps:$4 sm:$0xff]   ;;  %v5274_v62 = vld [vmem:[#allocation8 + $0x6ec] ss:$68 sps:$4 sm:$0xff]   ;;  %v5277_v1 = vld [vmem:[#allocation8 + $0x6f4] ss:$68 sps:$4 sm:$0xff]  }
  0x70   :  { %v5266_v60 = vld [vmem:[#allocation8 + $0x660] ss:$68 sps:$4 sm:$0xff]   ;;  %v5269_v63 = vld [vmem:[#allocation8 + $0x668] ss:$68 sps:$4 sm:$0xff]   ;;  %v5275_v2 = vld [vmem:[#allocation8 + $0x6f0] ss:$68 sps:$4 sm:$0xff]  }
  0x71   :  { %v5272_v0 = vld [vmem:[#allocation8 + $0x6e8] ss:$68 sps:$4 sm:$0xff]   ;;  %v5280_v3 = vld [vmem:[#allocation8 + $0x774] ss:$68 sps:$4 sm:$0xff]   ;;  %v5283_v4 = vld [vmem:[#allocation8 + $0x77c] ss:$68 sps:$4 sm:$0xff]  }
  0x72   :  { %3676 = vmatpush1.bf16.msra.mxu0 %v5212_v24  ;;  %3758 = vmatpush1.bf16.msra.mxu1 %v5215_v27  ;;  %v5278_v5 = vld [vmem:[#allocation8 + $0x770] ss:$68 sps:$4 sm:$0xff]   ;;  %v5281_v6 = vld [vmem:[#allocation8 + $0x778] ss:$68 sps:$4 sm:$0xff]   ;;  %v5289_v8 = vld [vmem:[#allocation8 + $0x804] ss:$68 sps:$4 sm:$0xff]  }
  0x73   :  { %3677 = vmatprep.subr.bf16.mxu0 %v5220_v26  ;;  %3759 = vmatprep.subr.bf16.mxu1 %v5223_v29  ;;  %v5286_v7 = vld [vmem:[#allocation8 + $0x7fc] ss:$68 sps:$4 sm:$0xff]   ;;  %v5292_v11 = vld [vmem:[#allocation8 + $0x884] ss:$68 sps:$4 sm:$0xff]   ;;  %v5295_v12 = vld [vmem:[#allocation8 + $0x88c] ss:$68 sps:$4 sm:$0xff]  }
  0x74   :  { %v5284_v9 = vld [vmem:[#allocation8 + $0x7f8] ss:$68 sps:$4 sm:$0xff]   ;;  %v5287_v10 = vld [vmem:[#allocation8 + $0x800] ss:$68 sps:$4 sm:$0xff]   ;;  %v6303_v14 = vshrl.u32 %v96_v13, 7  ;;  %s4513_s28 = sshll.u32 %s6212_s4, 4  ;;  %s4514_s28 = int_to_ptr.vmem [resolvable:$true] %s4513_s28 }
  0x75   :  { %v6305_v15 = vld [vmem:[#allocation7] sm:$0xf]  ;;  %v5352_v13 = vld [vmem:[#allocation8 + $0xdd4] ss:$68 sps:$4 sm:$0xff]   ;;  %s6172_s29 = scalar_lea.vmem %s4514_s28, 2176  ;;  %p6177_p13 = scmp.lt.s32.totalorder %s4514_s28, %s4514_s28 }
  0x76   :  { %3678 = vmatpush1.bf16.msra.mxu0 %v5218_v28  ;;  %3760 = vmatpush1.bf16.msra.mxu1 %v5221_v31  ;;  %v6308_v16 = vsub.s32 0, %v6303_v14  ;;  %v6311_v17 = vsub.s32 1, %v6303_v14  ;;  %v6316_v19 = vsub.s32 3, %v6303_v14  ;;  %v5290_v31 = vld [vmem:[#allocation8 + $0x880] ss:$68 sps:$4 sm:$0xff]   ;;  %p6173_p12 = scmp.ne.s32.totalorder %s4514_s28, %s6172_s29  ;;  %p6178_p0 = scmp.lt.s32.totalorder %s6172_s29, %s6172_s29 }
  0x77   :  { %3679 = vmatprep.subr.bf16.mxu0 %v5226_v30  ;;  %3761 = vmatprep.subr.bf16.mxu1 %v5229_v33 }
  0x78   :  { %v99_v18 = vrot.slane %v6305_v15, %v6308_v16  ;;  %v103_v20 = vrot.slane %v6305_v15, %v6311_v17  ;;  %v111_v24 = vrot.slane %v6305_v15, %v6316_v19  ;;  %p6179_p1 = por %p6178_p0, %p6177_p13 }
  0x7a   :  { %3680 = vmatpush1.bf16.msra.mxu0 %v5224_v32  ;;  %3762 = vmatpush1.bf16.msra.mxu1 %v5227_v35  ;;  %v5293_v32 = vld [vmem:[#allocation8 + $0x888] ss:$68 sps:$4 sm:$0xff]   ;;  %v5301_v35 = vld [vmem:[#allocation8 + $0x914] ss:$68 sps:$4 sm:$0xff]   ;;  %p6180_p2 = pnand %p6179_p1, %p6173_p12 }
  0x7b   :  { %3681 = vmatprep.subr.bf16.mxu0 %v5232_v34  ;;  %3763 = vmatprep.subr.bf16.mxu1 %v5235_v37  ;;  %v5298_v34 = vld [vmem:[#allocation8 + $0x90c] ss:$68 sps:$4 sm:$0xff]  }
  0x7e   :  { %3682 = vmatpush1.bf16.msra.mxu0 %v5230_v36  ;;  %3764 = vmatpush1.bf16.msra.mxu1 %v5233_v39 }
  0x7f   :  { %3683 = vmatprep.subr.bf16.mxu0 %v5238_v38  ;;  %3765 = vmatprep.subr.bf16.mxu1 %v5241_v41 }
  0x82   :  { %3684 = vmatpush1.bf16.msra.mxu0 %v5236_v40  ;;  %3766 = vmatpush1.bf16.msra.mxu1 %v5239_v43  ;;  %v5299_v43 = vld [vmem:[#allocation8 + $0x910] ss:$68 sps:$4 sm:$0xff]  }
  0x83   :  { %3685 = vmatprep.subr.bf16.mxu0 %v5244_v42  ;;  %3767 = vmatprep.subr.bf16.mxu1 %v5247_v45  ;;  %v5296_v42 = vld [vmem:[#allocation8 + $0x908] ss:$68 sps:$4 sm:$0xff]   ;;  %v5307_v45 = vld [vmem:[#allocation8 + $0x99c] ss:$68 sps:$4 sm:$0xff]  }
  0x86   :  { %3686 = vmatpush1.bf16.msra.mxu0 %v5242_v44  ;;  %3768 = vmatpush1.bf16.msra.mxu1 %v5245_v47  ;;  %v5304_v44 = vld [vmem:[#allocation8 + $0x994] ss:$68 sps:$4 sm:$0xff]  }
  0x87   :  { %3687 = vmatprep.subr.bf16.mxu0 %v5250_v46  ;;  %3769 = vmatprep.subr.bf16.mxu1 %v5253_v49  ;;  %v5302_v47 = vld [vmem:[#allocation8 + $0x990] ss:$68 sps:$4 sm:$0xff]   ;;  %v5310_v49 = vld [vmem:[#allocation8 + $0xa1c] ss:$68 sps:$4 sm:$0xff]  }
  0x8a   :  { %3688 = vmatpush1.bf16.msra.mxu0 %v5248_v48  ;;  %3770 = vmatpush1.bf16.msra.mxu1 %v5251_v51  ;;  %v5305_v48 = vld [vmem:[#allocation8 + $0x998] ss:$68 sps:$4 sm:$0xff]  }
  0x8b   :  { %3689 = vmatprep.subr.bf16.mxu0 %v5256_v50  ;;  %3771 = vmatprep.subr.bf16.mxu1 %v5259_v53  ;;  %v5313_v50 = vld [vmem:[#allocation8 + $0xa24] ss:$68 sps:$4 sm:$0xff]   ;;  %v5308_v51 = vld [vmem:[#allocation8 + $0xa18] ss:$68 sps:$4 sm:$0xff]  }
  0x8c   :  { %v5316_v53 = vld [vmem:[#allocation8 + $0xaa4] ss:$68 sps:$4 sm:$0xff]  }
  0x8e   :  { %3690 = vmatpush1.bf16.msra.mxu0 %v5254_v52  ;;  %3772 = vmatpush1.bf16.msra.mxu1 %v5257_v55  ;;  %v5311_v52 = vld [vmem:[#allocation8 + $0xa20] ss:$68 sps:$4 sm:$0xff]  }
  0x8f   :  { %3691 = vmatprep.subr.bf16.mxu0 %v5262_v54  ;;  %3773 = vmatprep.subr.bf16.mxu1 %v5265_v57  ;;  %v5319_v54 = vld [vmem:[#allocation8 + $0xaac] ss:$68 sps:$4 sm:$0xff]   ;;  %v5314_v55 = vld [vmem:[#allocation8 + $0xaa0] ss:$68 sps:$4 sm:$0xff]  }
  0x90   :  { %v5322_v57 = vld [vmem:[#allocation8 + $0xb2c] ss:$68 sps:$4 sm:$0xff]  }
  0x92   :  { %3692 = vmatpush1.bf16.msra.mxu0 %v5260_v56  ;;  %3774 = vmatpush1.bf16.msra.mxu1 %v5263_v59  ;;  %v5317_v56 = vld [vmem:[#allocation8 + $0xaa8] ss:$68 sps:$4 sm:$0xff]  }
  0x93   :  { %3693 = vmatprep.subr.bf16.mxu0 %v5268_v58  ;;  %3775 = vmatprep.subr.bf16.mxu1 %v5271_v61  ;;  %v5325_v58 = vld [vmem:[#allocation8 + $0xb34] ss:$68 sps:$4 sm:$0xff]   ;;  %v5320_v59 = vld [vmem:[#allocation8 + $0xb28] ss:$68 sps:$4 sm:$0xff]  }
  0x94   :  { %v5328_v61 = vld [vmem:[#allocation8 + $0xbb4] ss:$68 sps:$4 sm:$0xff]  }
  0x96   :  { %3694 = vmatpush1.bf16.msra.mxu0 %v5266_v60  ;;  %3776 = vmatpush1.bf16.msra.mxu1 %v5269_v63  ;;  %v5323_v60 = vld [vmem:[#allocation8 + $0xb30] ss:$68 sps:$4 sm:$0xff]  }
  0x97   :  { %3695 = vmatprep.subr.bf16.mxu0 %v5274_v62  ;;  %3777 = vmatprep.subr.bf16.mxu1 %v5277_v1  ;;  %v5331_v62 = vld [vmem:[#allocation8 + $0xbbc] ss:$68 sps:$4 sm:$0xff]   ;;  %v5326_v63 = vld [vmem:[#allocation8 + $0xbb0] ss:$68 sps:$4 sm:$0xff]  }
  0x98   :  { %v5334_v1 = vld [vmem:[#allocation8 + $0xc3c] ss:$68 sps:$4 sm:$0xff]  }
  0x9a   :  { %3696 = vmatpush1.bf16.msra.mxu0 %v5272_v0  ;;  %3778 = vmatpush1.bf16.msra.mxu1 %v5275_v2  ;;  %v5329_v0 = vld [vmem:[#allocation8 + $0xbb8] ss:$68 sps:$4 sm:$0xff]   ;;  %v5337_v2 = vld [vmem:[#allocation8 + $0xc44] ss:$68 sps:$4 sm:$0xff]  }
  0x9b   :  { %3697 = vmatprep.subr.bf16.mxu0 %v5280_v3  ;;  %3779 = vmatprep.subr.bf16.mxu1 %v5283_v4  ;;  %v5332_v3 = vld [vmem:[#allocation8 + $0xc38] ss:$68 sps:$4 sm:$0xff]   ;;  %v5335_v4 = vld [vmem:[#allocation8 + $0xc40] ss:$68 sps:$4 sm:$0xff]  }
  0x9e   :  { %3698 = vmatpush1.bf16.msra.mxu0 %v5278_v5  ;;  %3780 = vmatpush1.bf16.msra.mxu1 %v5281_v6  ;;  %v5340_v5 = vld [vmem:[#allocation8 + $0xcc4] ss:$68 sps:$4 sm:$0xff]   ;;  %v5343_v6 = vld [vmem:[#allocation8 + $0xccc] ss:$68 sps:$4 sm:$0xff]  }
  0x9f   :  { %3699 = vmatprep.subr.bf16.mxu0 %v5286_v7  ;;  %3781 = vmatprep.subr.bf16.mxu1 %v5289_v8  ;;  %v5338_v7 = vld [vmem:[#allocation8 + $0xcc0] ss:$68 sps:$4 sm:$0xff]   ;;  %v5341_v8 = vld [vmem:[#allocation8 + $0xcc8] ss:$68 sps:$4 sm:$0xff]  }
  0xa2   :  { %3700 = vmatpush1.bf16.msra.mxu0 %v5284_v9  ;;  %3782 = vmatpush1.bf16.msra.mxu1 %v5287_v10  ;;  %v5346_v9 = vld [vmem:[#allocation8 + $0xd4c] ss:$68 sps:$4 sm:$0xff]   ;;  %v5349_v10 = vld [vmem:[#allocation8 + $0xd54] ss:$68 sps:$4 sm:$0xff]  }
  0xa3   :  { %3710 = vmatprep.subr.bf16.mxu0 %v5292_v11  ;;  %3792 = vmatprep.subr.bf16.mxu1 %v5295_v12  ;;  %v5344_v11 = vld [vmem:[#allocation8 + $0xd48] ss:$68 sps:$4 sm:$0xff]   ;;  %v5347_v12 = vld [vmem:[#allocation8 + $0xd50] ss:$68 sps:$4 sm:$0xff]  }
 0x138   :  { %v194_v21 = vpop.f32.mrb[0].mxu0  ;;  %v6322_v29 = vpop.f32.mrb[0].mxu1 }
 0x139   :  { %v195_v22 = vadd.f32 %v194_v21, %v99_v18  ;;  %v196_v23 = vpop.f32.mrb[1].mxu0  ;;  %v237_v33 = vpop.f32.mrb[1].mxu1  ;;  %v5355_v18 = vld [vmem:[#allocation8 + $0xddc] ss:$68 sps:$4 sm:$0xff]  }
 0x13a   :  { %v197_v25 = vadd.f32 %v196_v23, %v103_v20  ;;  %v198_v26 = vpop.f32.mrb[2].mxu0  ;;  %v238_v36 = vadd.f32 %v237_v33, %v111_v24  ;;  %v239_v37 = vpop.f32.mrb[2].mxu1  ;;  %v5350_v20 = vld [vmem:[#allocation8 + $0xdd0] ss:$68 sps:$4 sm:$0xff]   ;;  %v5353_v21 = vld [vmem:[#allocation8 + $0xdd8] ss:$68 sps:$4 sm:$0xff]  }
 0x13b   :  { %v242_v27 = vmax.f32 %v195_v22, 0.0  ;;  %v199_v28 = vpop.f32.mrb[3].mxu0  ;;  %v240_v39 = vpop.f32.mrb[3].mxu1  ;;  %v5358_v22 = vld [vmem:[#allocation8 + $0xe5c] ss:$68 sps:$4 sm:$0xff]  }
 0x13c   :  { %v243_v30 = vmax.f32 %v197_v25, 0.0  ;;  %v245_v41 = vmax.f32 %v238_v36, 0.0  ;;  %v5361_v23 = vld [vmem:[#allocation8 + $0xe64] ss:$68 sps:$4 sm:$0xff]   ;;  %v5356_v24 = vld [vmem:[#allocation8 + $0xe58] ss:$68 sps:$4 sm:$0xff]  }
 0x13d   :  { %v6326_v40 = vpack.c.bf16 %v242_v27, %v242_v27  ;;  %v5359_v25 = vld [vmem:[#allocation8 + $0xe60] ss:$68 sps:$4 sm:$0xff]   ;;  %v5367_v27 = vld [vmem:[#allocation8 + $0xeec] ss:$68 sps:$4 sm:$0xff]   ;;  %v5373_v33 = vld [vmem:[#allocation8 + $0xf74] ss:$68 sps:$4 sm:$0xff]  }
 0x13e   :  { %v6324_v38 = vpack.c.bf16 %v243_v30, %v243_v30  ;;  %v6332_v46 = vpack.c.bf16 %v245_v41, %v245_v41  ;;  %v5364_v26 = vld [vmem:[#allocation8 + $0xee4] ss:$68 sps:$4 sm:$0xff]   ;;  %v5376_v37 = vld [vmem:[#allocation8 + $0xff4] ss:$68 sps:$4 sm:$0xff]   ;;  %v5379_v39 = vld [vmem:[#allocation8 + $0xffc] ss:$68 sps:$4 sm:$0xff]  }
 0x13f   :  { %v5362_v28 = vld [vmem:[#allocation8 + $0xee0] ss:$68 sps:$4 sm:$0xff]   ;;  %v5365_v30 = vld [vmem:[#allocation8 + $0xee8] ss:$68 sps:$4 sm:$0xff]  }
 0x140   :  { %3701 = vmatprep.mubr.bf16.mxu0 %v6324_v38  ;;  %3783 = vmatprep.mubr.bf16.mxu1 %v6324_v38 }
 0x141   :  { %3702 = vmatmul.mubr.bf16.vlgmr.msra.gmra.mrb[4].mxu0 %v6326_v40  ;;  %3784 = vmatmul.mubr.bf16.vlgmr.msra.gmra.mrb[4].mxu1 %v6326_v40 }
 0x142   :  { %3711 = vmatpush1.bf16.msra.mxu0 %v5290_v31  ;;  %3793 = vmatpush1.bf16.msra.mxu1 %v5293_v32  ;;  %v6337_v31 = vsub.s32 2, %v6303_v14  ;;  %v5370_v32 = vld [vmem:[#allocation8 + $0xf6c] ss:$68 sps:$4 sm:$0xff]  }
 0x143   :  { %3712 = vmatprep.subr.bf16.mxu0 %v5298_v34  ;;  %3794 = vmatprep.subr.bf16.mxu1 %v5301_v35  ;;  %v5368_v34 = vld [vmem:[#allocation8 + $0xf68] ss:$68 sps:$4 sm:$0xff]   ;;  %v5371_v35 = vld [vmem:[#allocation8 + $0xf70] ss:$68 sps:$4 sm:$0xff]  }
 0x144   :  { %3742 = vmatprep.mubr.bf16.mxu0 %v6332_v46  ;;  %3824 = vmatprep.mubr.bf16.mxu1 %v6332_v46  ;;  %v107_v36 = vrot.slane %v6305_v15, %v6337_v31  ;;  %v5380_v15 = vld [vmem:[#allocation8 + $0x1078] ss:$68 sps:$4 sm:$0xff]  }
 0x146   :  { %3713 = vmatpush1.bf16.msra.mxu0 %v5296_v42  ;;  %3795 = vmatpush1.bf16.msra.mxu1 %v5299_v43  ;;  %v236_v41 = vadd.f32 %v6322_v29, %v107_v36  ;;  %v5374_v42 = vld [vmem:[#allocation8 + $0xff0] ss:$68 sps:$4 sm:$0xff]   ;;  %v5377_v43 = vld [vmem:[#allocation8 + $0xff8] ss:$68 sps:$4 sm:$0xff]  }
 0x147   :  { %3714 = vmatprep.subr.bf16.mxu0 %v5304_v44  ;;  %3796 = vmatprep.subr.bf16.mxu1 %v5307_v45  ;;  %v5382_v44 = vld [vmem:[#allocation8 + $0x107c] ss:$68 sps:$4 sm:$0xff]   ;;  %v5385_v45 = vld [vmem:[#allocation8 + $0x1084] ss:$68 sps:$4 sm:$0xff]   ;;  %v5386_v29 = vld [vmem:[#allocation8 + $0x10] ss:$68 sps:$4 sm:$0xff]  }
 0x148   :  { %v5454_v36 = vld [vmem:[#allocation8 + $0x5ec] ss:$68 sps:$4 sm:$0xff]  }
 0x14a   :  { %3715 = vmatpush1.bf16.msra.mxu0 %v5302_v47  ;;  %3797 = vmatpush1.bf16.msra.mxu1 %v5305_v48  ;;  %v244_v47 = vmax.f32 %v236_v41, 0.0  ;;  %v5383_v48 = vld [vmem:[#allocation8 + $0x1080] ss:$68 sps:$4 sm:$0xff]   ;;  %v5455_v41 = vld [vmem:[#allocation8 + $0x5f0] ss:$68 sps:$4 sm:$0xff]  }
 0x14b   :  { %3716 = vmatprep.subr.bf16.mxu0 %v5310_v49  ;;  %3798 = vmatprep.subr.bf16.mxu1 %v5313_v50  ;;  %v5388_v49 = vld [vmem:[#allocation8 + $0x14] ss:$68 sps:$4 sm:$0xff]   ;;  %v5391_v50 = vld [vmem:[#allocation8 + $0x1c] ss:$68 sps:$4 sm:$0xff]  }
 0x14e   :  { %3717 = vmatpush1.bf16.msra.mxu0 %v5308_v51  ;;  %3799 = vmatpush1.bf16.msra.mxu1 %v5311_v52  ;;  %v6342_v51 = vpack.c.bf16 %v244_v47, %v244_v47  ;;  %v5389_v52 = vld [vmem:[#allocation8 + $0x18] ss:$68 sps:$4 sm:$0xff]  }
 0x14f   :  { %3718 = vmatprep.subr.bf16.mxu0 %v5316_v53  ;;  %3800 = vmatprep.subr.bf16.mxu1 %v5319_v54  ;;  %v5394_v53 = vld [vmem:[#allocation8 + $0x9c] ss:$68 sps:$4 sm:$0xff]   ;;  %v5397_v54 = vld [vmem:[#allocation8 + $0xa4] ss:$68 sps:$4 sm:$0xff]  }
 0x150   :  { %v5466_v47 = vld [vmem:[#allocation8 + $0x6fc] ss:$68 sps:$4 sm:$0xff]  }
 0x152   :  { %3719 = vmatpush1.bf16.msra.mxu0 %v5314_v55  ;;  %3801 = vmatpush1.bf16.msra.mxu1 %v5317_v56  ;;  %v5392_v55 = vld [vmem:[#allocation8 + $0x98] ss:$68 sps:$4 sm:$0xff]   ;;  %v5395_v56 = vld [vmem:[#allocation8 + $0xa0] ss:$68 sps:$4 sm:$0xff]  }
 0x153   :  { %3720 = vmatprep.subr.bf16.mxu0 %v5322_v57  ;;  %3802 = vmatprep.subr.bf16.mxu1 %v5325_v58  ;;  %v5400_v57 = vld [vmem:[#allocation8 + $0x124] ss:$68 sps:$4 sm:$0xff]   ;;  %v5403_v58 = vld [vmem:[#allocation8 + $0x12c] ss:$68 sps:$4 sm:$0xff]  }
 0x156   :  { %3721 = vmatpush1.bf16.msra.mxu0 %v5320_v59  ;;  %3803 = vmatpush1.bf16.msra.mxu1 %v5323_v60  ;;  %v5398_v59 = vld [vmem:[#allocation8 + $0x120] ss:$68 sps:$4 sm:$0xff]   ;;  %v5401_v60 = vld [vmem:[#allocation8 + $0x128] ss:$68 sps:$4 sm:$0xff]  }
 0x157   :  { %3722 = vmatprep.subr.bf16.mxu0 %v5328_v61  ;;  %3804 = vmatprep.subr.bf16.mxu1 %v5331_v62  ;;  %v5406_v61 = vld [vmem:[#allocation8 + $0x1ac] ss:$68 sps:$4 sm:$0xff]   ;;  %v5409_v62 = vld [vmem:[#allocation8 + $0x1b4] ss:$68 sps:$4 sm:$0xff]  }
 0x15a   :  { %3723 = vmatpush1.bf16.msra.mxu0 %v5326_v63  ;;  %3805 = vmatpush1.bf16.msra.mxu1 %v5329_v0  ;;  %v5404_v63 = vld [vmem:[#allocation8 + $0x1a8] ss:$68 sps:$4 sm:$0xff]   ;;  %v5407_v0 = vld [vmem:[#allocation8 + $0x1b0] ss:$68 sps:$4 sm:$0xff]  }
 0x15b   :  { %3724 = vmatprep.subr.bf16.mxu0 %v5334_v1  ;;  %3806 = vmatprep.subr.bf16.mxu1 %v5337_v2  ;;  %v5412_v1 = vld [vmem:[#allocation8 + $0x234] ss:$68 sps:$4 sm:$0xff]   ;;  %v5415_v2 = vld [vmem:[#allocation8 + $0x23c] ss:$68 sps:$4 sm:$0xff]  }
 0x15e   :  { %3725 = vmatpush1.bf16.msra.mxu0 %v5332_v3  ;;  %3807 = vmatpush1.bf16.msra.mxu1 %v5335_v4  ;;  %v5410_v3 = vld [vmem:[#allocation8 + $0x230] ss:$68 sps:$4 sm:$0xff]   ;;  %v5413_v4 = vld [vmem:[#allocation8 + $0x238] ss:$68 sps:$4 sm:$0xff]  }
 0x15f   :  { %3726 = vmatprep.subr.bf16.mxu0 %v5340_v5  ;;  %3808 = vmatprep.subr.bf16.mxu1 %v5343_v6  ;;  %v5418_v5 = vld [vmem:[#allocation8 + $0x2bc] ss:$68 sps:$4 sm:$0xff]   ;;  %v5421_v6 = vld [vmem:[#allocation8 + $0x2c4] ss:$68 sps:$4 sm:$0xff]  }
 0x162   :  { %3727 = vmatpush1.bf16.msra.mxu0 %v5338_v7  ;;  %3809 = vmatpush1.bf16.msra.mxu1 %v5341_v8  ;;  %v5416_v7 = vld [vmem:[#allocation8 + $0x2b8] ss:$68 sps:$4 sm:$0xff]   ;;  %v5419_v8 = vld [vmem:[#allocation8 + $0x2c0] ss:$68 sps:$4 sm:$0xff]  }
 0x163   :  { %3728 = vmatprep.subr.bf16.mxu0 %v5346_v9  ;;  %3810 = vmatprep.subr.bf16.mxu1 %v5349_v10  ;;  %v5424_v9 = vld [vmem:[#allocation8 + $0x344] ss:$68 sps:$4 sm:$0xff]   ;;  %v5427_v10 = vld [vmem:[#allocation8 + $0x34c] ss:$68 sps:$4 sm:$0xff]  }
 0x166   :  { %3729 = vmatpush1.bf16.msra.mxu0 %v5344_v11  ;;  %3811 = vmatpush1.bf16.msra.mxu1 %v5347_v12  ;;  %v5422_v11 = vld [vmem:[#allocation8 + $0x340] ss:$68 sps:$4 sm:$0xff]   ;;  %v5425_v12 = vld [vmem:[#allocation8 + $0x348] ss:$68 sps:$4 sm:$0xff]  }
 0x167   :  { %3730 = vmatprep.subr.bf16.mxu0 %v5352_v13  ;;  %3812 = vmatprep.subr.bf16.mxu1 %v5355_v18  ;;  %v5430_v13 = vld [vmem:[#allocation8 + $0x3cc] ss:$68 sps:$4 sm:$0xff]   ;;  %v5433_v18 = vld [vmem:[#allocation8 + $0x3d4] ss:$68 sps:$4 sm:$0xff]  }
 0x16a   :  { %3731 = vmatpush1.bf16.msra.mxu0 %v5350_v20  ;;  %3813 = vmatpush1.bf16.msra.mxu1 %v5353_v21  ;;  %v5428_v20 = vld [vmem:[#allocation8 + $0x3c8] ss:$68 sps:$4 sm:$0xff]   ;;  %v5431_v21 = vld [vmem:[#allocation8 + $0x3d0] ss:$68 sps:$4 sm:$0xff]  }
 0x16b   :  { %3732 = vmatprep.subr.bf16.mxu0 %v5358_v22  ;;  %3814 = vmatprep.subr.bf16.mxu1 %v5361_v23  ;;  %v5436_v22 = vld [vmem:[#allocation8 + $0x454] ss:$68 sps:$4 sm:$0xff]   ;;  %v5439_v23 = vld [vmem:[#allocation8 + $0x45c] ss:$68 sps:$4 sm:$0xff]  }
 0x16e   :  { %3733 = vmatpush1.bf16.msra.mxu0 %v5356_v24  ;;  %3815 = vmatpush1.bf16.msra.mxu1 %v5359_v25  ;;  %v5434_v24 = vld [vmem:[#allocation8 + $0x450] ss:$68 sps:$4 sm:$0xff]   ;;  %v5437_v25 = vld [vmem:[#allocation8 + $0x458] ss:$68 sps:$4 sm:$0xff]  }
 0x16f   :  { %3734 = vmatprep.subr.bf16.mxu0 %v5364_v26  ;;  %3816 = vmatprep.subr.bf16.mxu1 %v5367_v27  ;;  %v5442_v26 = vld [vmem:[#allocation8 + $0x4dc] ss:$68 sps:$4 sm:$0xff]   ;;  %v5445_v27 = vld [vmem:[#allocation8 + $0x4e4] ss:$68 sps:$4 sm:$0xff]  }
 0x172   :  { %3735 = vmatpush1.bf16.msra.mxu0 %v5362_v28  ;;  %3817 = vmatpush1.bf16.msra.mxu1 %v5365_v30  ;;  %v5440_v28 = vld [vmem:[#allocation8 + $0x4d8] ss:$68 sps:$4 sm:$0xff]   ;;  %v5443_v30 = vld [vmem:[#allocation8 + $0x4e0] ss:$68 sps:$4 sm:$0xff]  }
 0x173   :  { %3736 = vmatprep.subr.bf16.mxu0 %v5370_v32  ;;  %3818 = vmatprep.subr.bf16.mxu1 %v5373_v33  ;;  %v5448_v32 = vld [vmem:[#allocation8 + $0x564] ss:$68 sps:$4 sm:$0xff]   ;;  %v5451_v33 = vld [vmem:[#allocation8 + $0x56c] ss:$68 sps:$4 sm:$0xff]  }
 0x176   :  { %3737 = vmatpush1.bf16.msra.mxu0 %v5368_v34  ;;  %3819 = vmatpush1.bf16.msra.mxu1 %v5371_v35  ;;  %v5446_v34 = vld [vmem:[#allocation8 + $0x560] ss:$68 sps:$4 sm:$0xff]   ;;  %v5449_v35 = vld [vmem:[#allocation8 + $0x568] ss:$68 sps:$4 sm:$0xff]  }
 0x177   :  { %3738 = vmatprep.subr.bf16.mxu0 %v5376_v37  ;;  %3820 = vmatprep.subr.bf16.mxu1 %v5379_v39  ;;  %v5457_v37 = vld [vmem:[#allocation8 + $0x5f4] ss:$68 sps:$4 sm:$0xff]   ;;  %v5452_v39 = vld [vmem:[#allocation8 + $0x5e8] ss:$68 sps:$4 sm:$0xff]  }
 0x17a   :  { %3739 = vmatpush1.bf16.msra.mxu0 %v5374_v42  ;;  %3821 = vmatpush1.bf16.msra.mxu1 %v5377_v43  ;;  %v5460_v42 = vld [vmem:[#allocation8 + $0x674] ss:$68 sps:$4 sm:$0xff]   ;;  %v5463_v43 = vld [vmem:[#allocation8 + $0x67c] ss:$68 sps:$4 sm:$0xff]  }
 0x17b   :  { %3740 = vmatprep.subr.bf16.mxu0 %v5382_v44  ;;  %3822 = vmatprep.subr.bf16.mxu1 %v5385_v45  ;;  %v5458_v44 = vld [vmem:[#allocation8 + $0x670] ss:$68 sps:$4 sm:$0xff]   ;;  %v5461_v45 = vld [vmem:[#allocation8 + $0x678] ss:$68 sps:$4 sm:$0xff]  }
 0x17e   :  { %3741 = vmatpush1.bf16.msra.mxu0 %v5380_v15  ;;  %3823 = vmatpush1.bf16.msra.mxu1 %v5383_v48  ;;  %v5469_v15 = vld [vmem:[#allocation8 + $0x704] ss:$68 sps:$4 sm:$0xff]   ;;  %v5464_v48 = vld [vmem:[#allocation8 + $0x6f8] ss:$68 sps:$4 sm:$0xff]  }
 0x17f   :  { %3833 = vmatprep.subr.bf16.mxu0 %v5388_v49  ;;  %3915 = vmatprep.subr.bf16.mxu1 %v5391_v50  ;;  %v5467_v49 = vld [vmem:[#allocation8 + $0x700] ss:$68 sps:$4 sm:$0xff]  }
 0x180   :  { %v5472_v50 = vld [vmem:[#allocation8 + $0x784] ss:$68 sps:$4 sm:$0xff]  }
 0x181   :  { %3743 = vmatmul.mubr.bf16.vlgmr.msra.gmra.mrb[4].mxu0 %v6342_v51  ;;  %3825 = vmatmul.mubr.bf16.vlgmr.msra.gmra.mrb[4].mxu1 %v6342_v51 }
 0x182   :  { %3834 = vmatpush1.bf16.msra.mxu0 %v5386_v29  ;;  %3865 = vmatprep.mubr.bf16.mxu0 %v6324_v38  ;;  %v5475_v29 = vld [vmem:[#allocation8 + $0x78c] ss:$68 sps:$4 sm:$0xff]  }
 0x183   :  { %3916 = vmatpush1.bf16.msra.mxu1 %v5389_v52  ;;  %3947 = vmatprep.mubr.bf16.mxu1 %v6324_v38  ;;  %v5470_v52 = vld [vmem:[#allocation8 + $0x780] ss:$68 sps:$4 sm:$0xff]  }
 0x184   :  { %3835 = vmatprep.subr.bf16.mxu0 %v5394_v53  ;;  %3917 = vmatprep.subr.bf16.mxu1 %v5397_v54  ;;  %v5473_v53 = vld [vmem:[#allocation8 + $0x788] ss:$68 sps:$4 sm:$0xff]  }
 0x185   :  { %v5478_v54 = vld [vmem:[#allocation8 + $0x80c] ss:$68 sps:$4 sm:$0xff]  }
 0x186   :  { %3836 = vmatpush1.bf16.msra.mxu0 %v5392_v55  ;;  %v5481_v55 = vld [vmem:[#allocation8 + $0x814] ss:$68 sps:$4 sm:$0xff]  }
 0x187   :  { %3918 = vmatpush1.bf16.msra.mxu1 %v5395_v56  ;;  %3837 = vmatprep.subr.bf16.mxu0 %v5400_v57  ;;  %v5476_v56 = vld [vmem:[#allocation8 + $0x808] ss:$68 sps:$4 sm:$0xff]   ;;  %v5479_v57 = vld [vmem:[#allocation8 + $0x810] ss:$68 sps:$4 sm:$0xff]  }
 0x188   :  { %3919 = vmatprep.subr.bf16.mxu1 %v5403_v58  ;;  %v5484_v58 = vld [vmem:[#allocation8 + $0x894] ss:$68 sps:$4 sm:$0xff]  }
 0x18a   :  { %3838 = vmatpush1.bf16.msra.mxu0 %v5398_v59  ;;  %v5487_v59 = vld [vmem:[#allocation8 + $0x89c] ss:$68 sps:$4 sm:$0xff]  }
 0x18b   :  { %3920 = vmatpush1.bf16.msra.mxu1 %v5401_v60  ;;  %3839 = vmatprep.subr.bf16.mxu0 %v5406_v61  ;;  %v5482_v60 = vld [vmem:[#allocation8 + $0x890] ss:$68 sps:$4 sm:$0xff]   ;;  %v5485_v61 = vld [vmem:[#allocation8 + $0x898] ss:$68 sps:$4 sm:$0xff]  }
 0x18c   :  { %3921 = vmatprep.subr.bf16.mxu1 %v5409_v62  ;;  %v5490_v62 = vld [vmem:[#allocation8 + $0x91c] ss:$68 sps:$4 sm:$0xff]  }
 0x18e   :  { %3840 = vmatpush1.bf16.msra.mxu0 %v5404_v63  ;;  %v5493_v63 = vld [vmem:[#allocation8 + $0x924] ss:$68 sps:$4 sm:$0xff]  }
 0x18f   :  { %3922 = vmatpush1.bf16.msra.mxu1 %v5407_v0  ;;  %3841 = vmatprep.subr.bf16.mxu0 %v5412_v1  ;;  %v5488_v0 = vld [vmem:[#allocation8 + $0x918] ss:$68 sps:$4 sm:$0xff]   ;;  %v5491_v1 = vld [vmem:[#allocation8 + $0x920] ss:$68 sps:$4 sm:$0xff]  }
 0x190   :  { %3923 = vmatprep.subr.bf16.mxu1 %v5415_v2  ;;  %v5496_v2 = vld [vmem:[#allocation8 + $0x9a4] ss:$68 sps:$4 sm:$0xff]  }
 0x192   :  { %3842 = vmatpush1.bf16.msra.mxu0 %v5410_v3  ;;  %v5499_v3 = vld [vmem:[#allocation8 + $0x9ac] ss:$68 sps:$4 sm:$0xff]  }
 0x193   :  { %3924 = vmatpush1.bf16.msra.mxu1 %v5413_v4  ;;  %3843 = vmatprep.subr.bf16.mxu0 %v5418_v5  ;;  %v5494_v4 = vld [vmem:[#allocation8 + $0x9a0] ss:$68 sps:$4 sm:$0xff]   ;;  %v5497_v5 = vld [vmem:[#allocation8 + $0x9a8] ss:$68 sps:$4 sm:$0xff]  }
 0x194   :  { %3925 = vmatprep.subr.bf16.mxu1 %v5421_v6  ;;  %v5502_v6 = vld [vmem:[#allocation8 + $0xa2c] ss:$68 sps:$4 sm:$0xff]  }
 0x196   :  { %3844 = vmatpush1.bf16.msra.mxu0 %v5416_v7  ;;  %v5505_v7 = vld [vmem:[#allocation8 + $0xa34] ss:$68 sps:$4 sm:$0xff]  }
 0x197   :  { %3926 = vmatpush1.bf16.msra.mxu1 %v5419_v8  ;;  %3845 = vmatprep.subr.bf16.mxu0 %v5424_v9  ;;  %v5500_v8 = vld [vmem:[#allocation8 + $0xa28] ss:$68 sps:$4 sm:$0xff]   ;;  %v5503_v9 = vld [vmem:[#allocation8 + $0xa30] ss:$68 sps:$4 sm:$0xff]  }
 0x198   :  { %3927 = vmatprep.subr.bf16.mxu1 %v5427_v10  ;;  %v5508_v10 = vld [vmem:[#allocation8 + $0xab4] ss:$68 sps:$4 sm:$0xff]  }
 0x19a   :  { %3846 = vmatpush1.bf16.msra.mxu0 %v5422_v11  ;;  %v5511_v11 = vld [vmem:[#allocation8 + $0xabc] ss:$68 sps:$4 sm:$0xff]  }
 0x19b   :  { %3928 = vmatpush1.bf16.msra.mxu1 %v5425_v12  ;;  %3847 = vmatprep.subr.bf16.mxu0 %v5430_v13  ;;  %v5506_v12 = vld [vmem:[#allocation8 + $0xab0] ss:$68 sps:$4 sm:$0xff]   ;;  %v5509_v13 = vld [vmem:[#allocation8 + $0xab8] ss:$68 sps:$4 sm:$0xff]  }
 0x19c   :  { %3929 = vmatprep.subr.bf16.mxu1 %v5433_v18  ;;  %v5514_v18 = vld [vmem:[#allocation8 + $0xb3c] ss:$68 sps:$4 sm:$0xff]  }
 0x19e   :  { %3848 = vmatpush1.bf16.msra.mxu0 %v5428_v20  ;;  %v5517_v20 = vld [vmem:[#allocation8 + $0xb44] ss:$68 sps:$4 sm:$0xff]  }
 0x19f   :  { %3930 = vmatpush1.bf16.msra.mxu1 %v5431_v21  ;;  %3849 = vmatprep.subr.bf16.mxu0 %v5436_v22  ;;  %v5512_v21 = vld [vmem:[#allocation8 + $0xb38] ss:$68 sps:$4 sm:$0xff]   ;;  %v5515_v22 = vld [vmem:[#allocation8 + $0xb40] ss:$68 sps:$4 sm:$0xff]  }
 0x1a0   :  { %3931 = vmatprep.subr.bf16.mxu1 %v5439_v23  ;;  %v5520_v23 = vld [vmem:[#allocation8 + $0xbc4] ss:$68 sps:$4 sm:$0xff]  }
 0x1a2   :  { %3850 = vmatpush1.bf16.msra.mxu0 %v5434_v24  ;;  %v5523_v24 = vld [vmem:[#allocation8 + $0xbcc] ss:$68 sps:$4 sm:$0xff]  }
 0x1a3   :  { %3932 = vmatpush1.bf16.msra.mxu1 %v5437_v25  ;;  %3851 = vmatprep.subr.bf16.mxu0 %v5442_v26  ;;  %v5518_v25 = vld [vmem:[#allocation8 + $0xbc0] ss:$68 sps:$4 sm:$0xff]   ;;  %v5521_v26 = vld [vmem:[#allocation8 + $0xbc8] ss:$68 sps:$4 sm:$0xff]  }
 0x1a4   :  { %3933 = vmatprep.subr.bf16.mxu1 %v5445_v27  ;;  %v5526_v27 = vld [vmem:[#allocation8 + $0xc4c] ss:$68 sps:$4 sm:$0xff]  }
 0x1a6   :  { %3852 = vmatpush1.bf16.msra.mxu0 %v5440_v28  ;;  %v5529_v28 = vld [vmem:[#allocation8 + $0xc54] ss:$68 sps:$4 sm:$0xff]  }
 0x1a7   :  { %3934 = vmatpush1.bf16.msra.mxu1 %v5443_v30  ;;  %3853 = vmatprep.subr.bf16.mxu0 %v5448_v32  ;;  %v5524_v30 = vld [vmem:[#allocation8 + $0xc48] ss:$68 sps:$4 sm:$0xff]   ;;  %v5527_v32 = vld [vmem:[#allocation8 + $0xc50] ss:$68 sps:$4 sm:$0xff]  }
 0x1a8   :  { %3935 = vmatprep.subr.bf16.mxu1 %v5451_v33  ;;  %v5532_v33 = vld [vmem:[#allocation8 + $0xcd4] ss:$68 sps:$4 sm:$0xff]  }
 0x1aa   :  { %3854 = vmatpush1.bf16.msra.mxu0 %v5446_v34  ;;  %v5535_v34 = vld [vmem:[#allocation8 + $0xcdc] ss:$68 sps:$4 sm:$0xff]  }
 0x1ab   :  { %3936 = vmatpush1.bf16.msra.mxu1 %v5449_v35  ;;  %3855 = vmatprep.subr.bf16.mxu0 %v5454_v36  ;;  %v5530_v35 = vld [vmem:[#allocation8 + $0xcd0] ss:$68 sps:$4 sm:$0xff]   ;;  %v5533_v36 = vld [vmem:[#allocation8 + $0xcd8] ss:$68 sps:$4 sm:$0xff]  }
 0x1ac   :  { %3937 = vmatprep.subr.bf16.mxu1 %v5457_v37  ;;  %v5538_v37 = vld [vmem:[#allocation8 + $0xd5c] ss:$68 sps:$4 sm:$0xff]  }
 0x1ae   :  { %3856 = vmatpush1.bf16.msra.mxu0 %v5452_v39  ;;  %v5541_v39 = vld [vmem:[#allocation8 + $0xd64] ss:$68 sps:$4 sm:$0xff]  }
 0x1af   :  { %3938 = vmatpush1.bf16.msra.mxu1 %v5455_v41  ;;  %3857 = vmatprep.subr.bf16.mxu0 %v5460_v42  ;;  %v5536_v41 = vld [vmem:[#allocation8 + $0xd58] ss:$68 sps:$4 sm:$0xff]   ;;  %v5539_v42 = vld [vmem:[#allocation8 + $0xd60] ss:$68 sps:$4 sm:$0xff]  }
 0x1b0   :  { %3939 = vmatprep.subr.bf16.mxu1 %v5463_v43  ;;  %v5544_v43 = vld [vmem:[#allocation8 + $0xde4] ss:$68 sps:$4 sm:$0xff]  }
 0x1b2   :  { %3858 = vmatpush1.bf16.msra.mxu0 %v5458_v44  ;;  %v5547_v44 = vld [vmem:[#allocation8 + $0xdec] ss:$68 sps:$4 sm:$0xff]  }
 0x1b3   :  { %3940 = vmatpush1.bf16.msra.mxu1 %v5461_v45  ;;  %3859 = vmatprep.subr.bf16.mxu0 %v5466_v47  ;;  %v5542_v45 = vld [vmem:[#allocation8 + $0xde0] ss:$68 sps:$4 sm:$0xff]   ;;  %v5545_v47 = vld [vmem:[#allocation8 + $0xde8] ss:$68 sps:$4 sm:$0xff]  }
 0x1b4   :  { %3941 = vmatprep.subr.bf16.mxu1 %v5469_v15  ;;  %v5550_v15 = vld [vmem:[#allocation8 + $0xe6c] ss:$68 sps:$4 sm:$0xff]  }
 0x1b6   :  { %3860 = vmatpush1.bf16.msra.mxu0 %v5464_v48  ;;  %v5553_v48 = vld [vmem:[#allocation8 + $0xe74] ss:$68 sps:$4 sm:$0xff]  }
 0x1b7   :  { %3942 = vmatpush1.bf16.msra.mxu1 %v5467_v49  ;;  %3861 = vmatprep.subr.bf16.mxu0 %v5472_v50  ;;  %v5548_v49 = vld [vmem:[#allocation8 + $0xe68] ss:$68 sps:$4 sm:$0xff]   ;;  %v5551_v50 = vld [vmem:[#allocation8 + $0xe70] ss:$68 sps:$4 sm:$0xff]  }
 0x1b8   :  { %3943 = vmatprep.subr.bf16.mxu1 %v5475_v29  ;;  %v5556_v29 = vld [vmem:[#allocation8 + $0xef4] ss:$68 sps:$4 sm:$0xff]  }
 0x1ba   :  { %3862 = vmatpush1.bf16.msra.mxu0 %v5470_v52  ;;  %v5559_v52 = vld [vmem:[#allocation8 + $0xefc] ss:$68 sps:$4 sm:$0xff]  }
 0x1bb   :  { %3944 = vmatpush1.bf16.msra.mxu1 %v5473_v53  ;;  %3863 = vmatprep.subr.bf16.mxu0 %v5478_v54  ;;  %v5554_v53 = vld [vmem:[#allocation8 + $0xef0] ss:$68 sps:$4 sm:$0xff]   ;;  %v5557_v54 = vld [vmem:[#allocation8 + $0xef8] ss:$68 sps:$4 sm:$0xff]  }
 0x1bc   :  { %3945 = vmatprep.subr.bf16.mxu1 %v5481_v55  ;;  %v5562_v55 = vld [vmem:[#allocation8 + $0xf7c] ss:$68 sps:$4 sm:$0xff]  }
 0x1be   :  { %3864 = vmatpush1.bf16.msra.mxu0 %v5476_v56  ;;  %v5565_v56 = vld [vmem:[#allocation8 + $0xf84] ss:$68 sps:$4 sm:$0xff]  }
 0x1bf   :  { %3946 = vmatpush1.bf16.msra.mxu1 %v5479_v57  ;;  %3874 = vmatprep.subr.bf16.mxu0 %v5484_v58  ;;  %v5560_v57 = vld [vmem:[#allocation8 + $0xf78] ss:$68 sps:$4 sm:$0xff]   ;;  %v5563_v58 = vld [vmem:[#allocation8 + $0xf80] ss:$68 sps:$4 sm:$0xff]  }
 0x1c0   :  { %3956 = vmatprep.subr.bf16.mxu1 %v5487_v59  ;;  %v5568_v59 = vld [vmem:[#allocation8 + $0x1004] ss:$68 sps:$4 sm:$0xff]  }
 0x1c1   :  { %3866 = vmatmul.mubr.bf16.vlgmr.msra.gmra.mrb[8].mxu0 %v6326_v40 }
 0x1c2   :  { %3948 = vmatmul.mubr.bf16.vlgmr.msra.gmra.mrb[8].mxu1 %v6326_v40  ;;  %3875 = vmatpush1.bf16.msra.mxu0 %v5482_v60  ;;  %v5571_v60 = vld [vmem:[#allocation8 + $0x100c] ss:$68 sps:$4 sm:$0xff]  }
 0x1c3   :  { %3906 = vmatprep.mubr.bf16.mxu0 %v6332_v46  ;;  %3957 = vmatpush1.bf16.msra.mxu1 %v5485_v61  ;;  %v5566_v61 = vld [vmem:[#allocation8 + $0x1000] ss:$68 sps:$4 sm:$0xff]  }
 0x1c4   :  { %3988 = vmatprep.mubr.bf16.mxu1 %v6332_v46  ;;  %3876 = vmatprep.subr.bf16.mxu0 %v5490_v62  ;;  %v5569_v62 = vld [vmem:[#allocation8 + $0x1008] ss:$68 sps:$4 sm:$0xff]  }
 0x1c5   :  { %3958 = vmatprep.subr.bf16.mxu1 %v5493_v63  ;;  %v5574_v63 = vld [vmem:[#allocation8 + $0x108c] ss:$68 sps:$4 sm:$0xff]  }
 0x1c6   :  { %3877 = vmatpush1.bf16.msra.mxu0 %v5488_v0  ;;  %v5577_v0 = vld [vmem:[#allocation8 + $0x1094] ss:$68 sps:$4 sm:$0xff]  }
 0x1c7   :  { %3959 = vmatpush1.bf16.msra.mxu1 %v5491_v1  ;;  %3878 = vmatprep.subr.bf16.mxu0 %v5496_v2  ;;  %v5572_v1 = vld [vmem:[#allocation8 + $0x1088] ss:$68 sps:$4 sm:$0xff]   ;;  %v5575_v2 = vld [vmem:[#allocation8 + $0x1090] ss:$68 sps:$4 sm:$0xff]  }
 0x1c8   :  { %3960 = vmatprep.subr.bf16.mxu1 %v5499_v3  ;;  %v5580_v3 = vld [vmem:[#allocation8 + $0x24] ss:$68 sps:$4 sm:$0xff]  }
 0x1ca   :  { %3879 = vmatpush1.bf16.msra.mxu0 %v5494_v4  ;;  %v5583_v4 = vld [vmem:[#allocation8 + $0x2c] ss:$68 sps:$4 sm:$0xff]  }
 0x1cb   :  { %3961 = vmatpush1.bf16.msra.mxu1 %v5497_v5  ;;  %3880 = vmatprep.subr.bf16.mxu0 %v5502_v6  ;;  %v5578_v5 = vld [vmem:[#allocation8 + $0x20] ss:$68 sps:$4 sm:$0xff]   ;;  %v5581_v6 = vld [vmem:[#allocation8 + $0x28] ss:$68 sps:$4 sm:$0xff]  }
 0x1cc   :  { %3962 = vmatprep.subr.bf16.mxu1 %v5505_v7  ;;  %v5586_v7 = vld [vmem:[#allocation8 + $0xac] ss:$68 sps:$4 sm:$0xff]  }
 0x1ce   :  { %3881 = vmatpush1.bf16.msra.mxu0 %v5500_v8  ;;  %v5589_v8 = vld [vmem:[#allocation8 + $0xb4] ss:$68 sps:$4 sm:$0xff]  }
 0x1cf   :  { %3963 = vmatpush1.bf16.msra.mxu1 %v5503_v9  ;;  %3882 = vmatprep.subr.bf16.mxu0 %v5508_v10  ;;  %v5584_v9 = vld [vmem:[#allocation8 + $0xa8] ss:$68 sps:$4 sm:$0xff]   ;;  %v5587_v10 = vld [vmem:[#allocation8 + $0xb0] ss:$68 sps:$4 sm:$0xff]  }
 0x1d0   :  { %3964 = vmatprep.subr.bf16.mxu1 %v5511_v11  ;;  %v5592_v11 = vld [vmem:[#allocation8 + $0x134] ss:$68 sps:$4 sm:$0xff]  }
 0x1d2   :  { %3883 = vmatpush1.bf16.msra.mxu0 %v5506_v12  ;;  %v5595_v12 = vld [vmem:[#allocation8 + $0x13c] ss:$68 sps:$4 sm:$0xff]  }
 0x1d3   :  { %3965 = vmatpush1.bf16.msra.mxu1 %v5509_v13  ;;  %3884 = vmatprep.subr.bf16.mxu0 %v5514_v18  ;;  %v5590_v13 = vld [vmem:[#allocation8 + $0x130] ss:$68 sps:$4 sm:$0xff]   ;;  %v5593_v18 = vld [vmem:[#allocation8 + $0x138] ss:$68 sps:$4 sm:$0xff]  }
 0x1d4   :  { %3966 = vmatprep.subr.bf16.mxu1 %v5517_v20  ;;  %v5598_v20 = vld [vmem:[#allocation8 + $0x1bc] ss:$68 sps:$4 sm:$0xff]  }
 0x1d6   :  { %3885 = vmatpush1.bf16.msra.mxu0 %v5512_v21  ;;  %v5601_v21 = vld [vmem:[#allocation8 + $0x1c4] ss:$68 sps:$4 sm:$0xff]  }
 0x1d7   :  { %3967 = vmatpush1.bf16.msra.mxu1 %v5515_v22  ;;  %3886 = vmatprep.subr.bf16.mxu0 %v5520_v23  ;;  %v5596_v22 = vld [vmem:[#allocation8 + $0x1b8] ss:$68 sps:$4 sm:$0xff]   ;;  %v5599_v23 = vld [vmem:[#allocation8 + $0x1c0] ss:$68 sps:$4 sm:$0xff]  }
 0x1d8   :  { %3968 = vmatprep.subr.bf16.mxu1 %v5523_v24  ;;  %v5604_v24 = vld [vmem:[#allocation8 + $0x244] ss:$68 sps:$4 sm:$0xff]  }
 0x1da   :  { %3887 = vmatpush1.bf16.msra.mxu0 %v5518_v25  ;;  %v5607_v25 = vld [vmem:[#allocation8 + $0x24c] ss:$68 sps:$4 sm:$0xff]  }
 0x1db   :  { %3969 = vmatpush1.bf16.msra.mxu1 %v5521_v26  ;;  %3888 = vmatprep.subr.bf16.mxu0 %v5526_v27  ;;  %v5602_v26 = vld [vmem:[#allocation8 + $0x240] ss:$68 sps:$4 sm:$0xff]   ;;  %v5605_v27 = vld [vmem:[#allocation8 + $0x248] ss:$68 sps:$4 sm:$0xff]  }
 0x1dc   :  { %3970 = vmatprep.subr.bf16.mxu1 %v5529_v28  ;;  %v5610_v28 = vld [vmem:[#allocation8 + $0x2cc] ss:$68 sps:$4 sm:$0xff]  }
 0x1de   :  { %3889 = vmatpush1.bf16.msra.mxu0 %v5524_v30  ;;  %v5613_v30 = vld [vmem:[#allocation8 + $0x2d4] ss:$68 sps:$4 sm:$0xff]  }
 0x1df   :  { %3971 = vmatpush1.bf16.msra.mxu1 %v5527_v32  ;;  %3890 = vmatprep.subr.bf16.mxu0 %v5532_v33  ;;  %v5608_v32 = vld [vmem:[#allocation8 + $0x2c8] ss:$68 sps:$4 sm:$0xff]   ;;  %v5611_v33 = vld [vmem:[#allocation8 + $0x2d0] ss:$68 sps:$4 sm:$0xff]  }
 0x1e0   :  { %3972 = vmatprep.subr.bf16.mxu1 %v5535_v34  ;;  %v5616_v34 = vld [vmem:[#allocation8 + $0x354] ss:$68 sps:$4 sm:$0xff]  }
 0x1e2   :  { %3891 = vmatpush1.bf16.msra.mxu0 %v5530_v35  ;;  %v5619_v35 = vld [vmem:[#allocation8 + $0x35c] ss:$68 sps:$4 sm:$0xff]  }
 0x1e3   :  { %3973 = vmatpush1.bf16.msra.mxu1 %v5533_v36  ;;  %3892 = vmatprep.subr.bf16.mxu0 %v5538_v37  ;;  %v5614_v36 = vld [vmem:[#allocation8 + $0x350] ss:$68 sps:$4 sm:$0xff]   ;;  %v5617_v37 = vld [vmem:[#allocation8 + $0x358] ss:$68 sps:$4 sm:$0xff]  }
 0x1e4   :  { %3974 = vmatprep.subr.bf16.mxu1 %v5541_v39  ;;  %v5622_v39 = vld [vmem:[#allocation8 + $0x3dc] ss:$68 sps:$4 sm:$0xff]  }
 0x1e6   :  { %3893 = vmatpush1.bf16.msra.mxu0 %v5536_v41  ;;  %v5625_v41 = vld [vmem:[#allocation8 + $0x3e4] ss:$68 sps:$4 sm:$0xff]  }
 0x1e7   :  { %3975 = vmatpush1.bf16.msra.mxu1 %v5539_v42  ;;  %3894 = vmatprep.subr.bf16.mxu0 %v5544_v43  ;;  %v5620_v42 = vld [vmem:[#allocation8 + $0x3d8] ss:$68 sps:$4 sm:$0xff]   ;;  %v5623_v43 = vld [vmem:[#allocation8 + $0x3e0] ss:$68 sps:$4 sm:$0xff]  }
 0x1e8   :  { %3976 = vmatprep.subr.bf16.mxu1 %v5547_v44  ;;  %v5628_v44 = vld [vmem:[#allocation8 + $0x464] ss:$68 sps:$4 sm:$0xff]  }
 0x1ea   :  { %3895 = vmatpush1.bf16.msra.mxu0 %v5542_v45  ;;  %v5631_v45 = vld [vmem:[#allocation8 + $0x46c] ss:$68 sps:$4 sm:$0xff]  }
 0x1eb   :  { %3977 = vmatpush1.bf16.msra.mxu1 %v5545_v47  ;;  %3896 = vmatprep.subr.bf16.mxu0 %v5550_v15  ;;  %v5626_v47 = vld [vmem:[#allocation8 + $0x460] ss:$68 sps:$4 sm:$0xff]   ;;  %v5629_v15 = vld [vmem:[#allocation8 + $0x468] ss:$68 sps:$4 sm:$0xff]  }
 0x1ec   :  { %3978 = vmatprep.subr.bf16.mxu1 %v5553_v48  ;;  %v5634_v48 = vld [vmem:[#allocation8 + $0x4ec] ss:$68 sps:$4 sm:$0xff]  }
 0x1ee   :  { %3897 = vmatpush1.bf16.msra.mxu0 %v5548_v49  ;;  %v5637_v49 = vld [vmem:[#allocation8 + $0x4f4] ss:$68 sps:$4 sm:$0xff]  }
 0x1ef   :  { %3979 = vmatpush1.bf16.msra.mxu1 %v5551_v50  ;;  %3898 = vmatprep.subr.bf16.mxu0 %v5556_v29  ;;  %v5632_v50 = vld [vmem:[#allocation8 + $0x4e8] ss:$68 sps:$4 sm:$0xff]   ;;  %v5635_v29 = vld [vmem:[#allocation8 + $0x4f0] ss:$68 sps:$4 sm:$0xff]  }
 0x1f0   :  { %3980 = vmatprep.subr.bf16.mxu1 %v5559_v52  ;;  %v5640_v52 = vld [vmem:[#allocation8 + $0x574] ss:$68 sps:$4 sm:$0xff]  }
 0x1f2   :  { %3899 = vmatpush1.bf16.msra.mxu0 %v5554_v53  ;;  %v5643_v53 = vld [vmem:[#allocation8 + $0x57c] ss:$68 sps:$4 sm:$0xff]  }
 0x1f3   :  { %3981 = vmatpush1.bf16.msra.mxu1 %v5557_v54  ;;  %3900 = vmatprep.subr.bf16.mxu0 %v5562_v55  ;;  %v5638_v54 = vld [vmem:[#allocation8 + $0x570] ss:$68 sps:$4 sm:$0xff]   ;;  %v5641_v55 = vld [vmem:[#allocation8 + $0x578] ss:$68 sps:$4 sm:$0xff]  }
 0x1f4   :  { %3982 = vmatprep.subr.bf16.mxu1 %v5565_v56  ;;  %v5646_v56 = vld [vmem:[#allocation8 + $0x5fc] ss:$68 sps:$4 sm:$0xff]  }
 0x1f6   :  { %3901 = vmatpush1.bf16.msra.mxu0 %v5560_v57  ;;  %v5649_v57 = vld [vmem:[#allocation8 + $0x604] ss:$68 sps:$4 sm:$0xff]  }
 0x1f7   :  { %3983 = vmatpush1.bf16.msra.mxu1 %v5563_v58  ;;  %3902 = vmatprep.subr.bf16.mxu0 %v5568_v59  ;;  %v5644_v58 = vld [vmem:[#allocation8 + $0x5f8] ss:$68 sps:$4 sm:$0xff]   ;;  %v5647_v59 = vld [vmem:[#allocation8 + $0x600] ss:$68 sps:$4 sm:$0xff]  }
 0x1f8   :  { %3984 = vmatprep.subr.bf16.mxu1 %v5571_v60  ;;  %v5652_v60 = vld [vmem:[#allocation8 + $0x684] ss:$68 sps:$4 sm:$0xff]  }
 0x1fa   :  { %3903 = vmatpush1.bf16.msra.mxu0 %v5566_v61  ;;  %v5655_v61 = vld [vmem:[#allocation8 + $0x68c] ss:$68 sps:$4 sm:$0xff]  }
 0x1fb   :  { %3985 = vmatpush1.bf16.msra.mxu1 %v5569_v62  ;;  %3904 = vmatprep.subr.bf16.mxu0 %v5574_v63  ;;  %v5650_v62 = vld [vmem:[#allocation8 + $0x680] ss:$68 sps:$4 sm:$0xff]   ;;  %v5653_v63 = vld [vmem:[#allocation8 + $0x688] ss:$68 sps:$4 sm:$0xff]  }
 0x1fc   :  { %3986 = vmatprep.subr.bf16.mxu1 %v5577_v0  ;;  %v5658_v0 = vld [vmem:[#allocation8 + $0x70c] ss:$68 sps:$4 sm:$0xff]  }
 0x1fe   :  { %3905 = vmatpush1.bf16.msra.mxu0 %v5572_v1  ;;  %v5661_v1 = vld [vmem:[#allocation8 + $0x714] ss:$68 sps:$4 sm:$0xff]  }
 0x1ff   :  { %3987 = vmatpush1.bf16.msra.mxu1 %v5575_v2  ;;  %3997 = vmatprep.subr.bf16.mxu0 %v5580_v3  ;;  %v5656_v2 = vld [vmem:[#allocation8 + $0x708] ss:$68 sps:$4 sm:$0xff]   ;;  %v5659_v3 = vld [vmem:[#allocation8 + $0x710] ss:$68 sps:$4 sm:$0xff]  }
 0x200   :  { %4079 = vmatprep.subr.bf16.mxu1 %v5583_v4  ;;  %v5664_v4 = vld [vmem:[#allocation8 + $0x794] ss:$68 sps:$4 sm:$0xff]  }
 0x201   :  { %3907 = vmatmul.mubr.bf16.vlgmr.msra.gmra.mrb[8].mxu0 %v6342_v51 }
 0x202   :  { %3989 = vmatmul.mubr.bf16.vlgmr.msra.gmra.mrb[8].mxu1 %v6342_v51  ;;  %3998 = vmatpush1.bf16.msra.mxu0 %v5578_v5  ;;  %v5667_v5 = vld [vmem:[#allocation8 + $0x79c] ss:$68 sps:$4 sm:$0xff]  }
 0x203   :  { %4029 = vmatprep.mubr.bf16.mxu0 %v6324_v38  ;;  %4080 = vmatpush1.bf16.msra.mxu1 %v5581_v6  ;;  %v5662_v6 = vld [vmem:[#allocation8 + $0x790] ss:$68 sps:$4 sm:$0xff]  }
 0x204   :  { %4111 = vmatprep.mubr.bf16.mxu1 %v6324_v38  ;;  %3999 = vmatprep.subr.bf16.mxu0 %v5586_v7  ;;  %v5665_v7 = vld [vmem:[#allocation8 + $0x798] ss:$68 sps:$4 sm:$0xff]  }
 0x205   :  { %4081 = vmatprep.subr.bf16.mxu1 %v5589_v8  ;;  %v5670_v8 = vld [vmem:[#allocation8 + $0x81c] ss:$68 sps:$4 sm:$0xff]  }
 0x206   :  { %4000 = vmatpush1.bf16.msra.mxu0 %v5584_v9  ;;  %v5673_v9 = vld [vmem:[#allocation8 + $0x824] ss:$68 sps:$4 sm:$0xff]  }
 0x207   :  { %4082 = vmatpush1.bf16.msra.mxu1 %v5587_v10  ;;  %4001 = vmatprep.subr.bf16.mxu0 %v5592_v11  ;;  %v5668_v10 = vld [vmem:[#allocation8 + $0x818] ss:$68 sps:$4 sm:$0xff]   ;;  %v5671_v11 = vld [vmem:[#allocation8 + $0x820] ss:$68 sps:$4 sm:$0xff]  }
 0x208   :  { %4083 = vmatprep.subr.bf16.mxu1 %v5595_v12  ;;  %v5676_v12 = vld [vmem:[#allocation8 + $0x8a4] ss:$68 sps:$4 sm:$0xff]  }
 0x20a   :  { %4002 = vmatpush1.bf16.msra.mxu0 %v5590_v13  ;;  %v5679_v13 = vld [vmem:[#allocation8 + $0x8ac] ss:$68 sps:$4 sm:$0xff]  }
 0x20b   :  { %4084 = vmatpush1.bf16.msra.mxu1 %v5593_v18  ;;  %4003 = vmatprep.subr.bf16.mxu0 %v5598_v20  ;;  %v5674_v18 = vld [vmem:[#allocation8 + $0x8a0] ss:$68 sps:$4 sm:$0xff]   ;;  %v5677_v20 = vld [vmem:[#allocation8 + $0x8a8] ss:$68 sps:$4 sm:$0xff]  }
 0x20c   :  { %4085 = vmatprep.subr.bf16.mxu1 %v5601_v21  ;;  %v5682_v21 = vld [vmem:[#allocation8 + $0x92c] ss:$68 sps:$4 sm:$0xff]  }
 0x20e   :  { %4004 = vmatpush1.bf16.msra.mxu0 %v5596_v22  ;;  %v5685_v22 = vld [vmem:[#allocation8 + $0x934] ss:$68 sps:$4 sm:$0xff]  }
 0x20f   :  { %4086 = vmatpush1.bf16.msra.mxu1 %v5599_v23  ;;  %4005 = vmatprep.subr.bf16.mxu0 %v5604_v24  ;;  %v5680_v23 = vld [vmem:[#allocation8 + $0x928] ss:$68 sps:$4 sm:$0xff]   ;;  %v5683_v24 = vld [vmem:[#allocation8 + $0x930] ss:$68 sps:$4 sm:$0xff]  }
 0x210   :  { %4087 = vmatprep.subr.bf16.mxu1 %v5607_v25  ;;  %v5688_v25 = vld [vmem:[#allocation8 + $0x9b4] ss:$68 sps:$4 sm:$0xff]  }
 0x212   :  { %4006 = vmatpush1.bf16.msra.mxu0 %v5602_v26  ;;  %v5691_v26 = vld [vmem:[#allocation8 + $0x9bc] ss:$68 sps:$4 sm:$0xff]  }
 0x213   :  { %4088 = vmatpush1.bf16.msra.mxu1 %v5605_v27  ;;  %4007 = vmatprep.subr.bf16.mxu0 %v5610_v28  ;;  %v5686_v27 = vld [vmem:[#allocation8 + $0x9b0] ss:$68 sps:$4 sm:$0xff]   ;;  %v5689_v28 = vld [vmem:[#allocation8 + $0x9b8] ss:$68 sps:$4 sm:$0xff]  }
 0x214   :  { %4089 = vmatprep.subr.bf16.mxu1 %v5613_v30  ;;  %v5694_v30 = vld [vmem:[#allocation8 + $0xa3c] ss:$68 sps:$4 sm:$0xff]  }
 0x216   :  { %4008 = vmatpush1.bf16.msra.mxu0 %v5608_v32  ;;  %v5697_v32 = vld [vmem:[#allocation8 + $0xa44] ss:$68 sps:$4 sm:$0xff]  }
 0x217   :  { %4090 = vmatpush1.bf16.msra.mxu1 %v5611_v33  ;;  %4009 = vmatprep.subr.bf16.mxu0 %v5616_v34  ;;  %v5692_v33 = vld [vmem:[#allocation8 + $0xa38] ss:$68 sps:$4 sm:$0xff]   ;;  %v5695_v34 = vld [vmem:[#allocation8 + $0xa40] ss:$68 sps:$4 sm:$0xff]  }
 0x218   :  { %4091 = vmatprep.subr.bf16.mxu1 %v5619_v35  ;;  %v5700_v35 = vld [vmem:[#allocation8 + $0xac4] ss:$68 sps:$4 sm:$0xff]  }
 0x21a   :  { %4010 = vmatpush1.bf16.msra.mxu0 %v5614_v36  ;;  %v5703_v36 = vld [vmem:[#allocation8 + $0xacc] ss:$68 sps:$4 sm:$0xff]  }
 0x21b   :  { %4092 = vmatpush1.bf16.msra.mxu1 %v5617_v37  ;;  %4011 = vmatprep.subr.bf16.mxu0 %v5622_v39  ;;  %v5698_v37 = vld [vmem:[#allocation8 + $0xac0] ss:$68 sps:$4 sm:$0xff]  }
 0x21c   :  { %4093 = vmatprep.subr.bf16.mxu1 %v5625_v41  ;;  %v6360_v39 = vld [vmem:[#allocation10] sm:$0xff]  ;;  %v5701_v41 = vld [vmem:[#allocation8 + $0xac8] ss:$68 sps:$4 sm:$0xff]  }
 0x21e   :  { %4012 = vmatpush1.bf16.msra.mxu0 %v5620_v42  ;;  %v5706_v42 = vld [vmem:[#allocation8 + $0xb4c] ss:$68 sps:$4 sm:$0xff]  }
 0x21f   :  { %4094 = vmatpush1.bf16.msra.mxu1 %v5623_v43  ;;  %4013 = vmatprep.subr.bf16.mxu0 %v5628_v44  ;;  %v5709_v43 = vld [vmem:[#allocation8 + $0xb54] ss:$68 sps:$4 sm:$0xff]   ;;  %v835_v44 = vrot.slane %v6360_v39, %v6308_v16 }
 0x220   :  { %4095 = vmatprep.subr.bf16.mxu1 %v5631_v45  ;;  %v843_v45 = vrot.slane %v6360_v39, %v6337_v31 }
 0x222   :  { %4014 = vmatpush1.bf16.msra.mxu0 %v5626_v47  ;;  %v839_v47 = vrot.slane %v6360_v39, %v6311_v17 }
 0x223   :  { %4096 = vmatpush1.bf16.msra.mxu1 %v5629_v15  ;;  %4015 = vmatprep.subr.bf16.mxu0 %v5634_v48  ;;  %v847_v15 = vrot.slane %v6360_v39, %v6316_v19  ;;  %v5704_v48 = vld [vmem:[#allocation8 + $0xb48] ss:$68 sps:$4 sm:$0xff]  }
 0x224   :  { %4097 = vmatprep.subr.bf16.mxu1 %v5637_v49  ;;  %v5707_v49 = vld [vmem:[#allocation8 + $0xb50] ss:$68 sps:$4 sm:$0xff]  }
 0x226   :  { %4016 = vmatpush1.bf16.msra.mxu0 %v5632_v50  ;;  %v5712_v50 = vld [vmem:[#allocation8 + $0xbd4] ss:$68 sps:$4 sm:$0xff]  }
 0x227   :  { %4098 = vmatpush1.bf16.msra.mxu1 %v5635_v29  ;;  %4017 = vmatprep.subr.bf16.mxu0 %v5640_v52 }
 0x228   :  { %4099 = vmatprep.subr.bf16.mxu1 %v5643_v53  ;;  %v5715_v53 = vld [vmem:[#allocation8 + $0xbdc] ss:$68 sps:$4 sm:$0xff]  }
 0x22a   :  { %4018 = vmatpush1.bf16.msra.mxu0 %v5638_v54 }
 0x22b   :  { %4100 = vmatpush1.bf16.msra.mxu1 %v5641_v55  ;;  %4019 = vmatprep.subr.bf16.mxu0 %v5646_v56 }
 0x22c   :  { %4101 = vmatprep.subr.bf16.mxu1 %v5649_v57 }
 0x22e   :  { %4020 = vmatpush1.bf16.msra.mxu0 %v5644_v58 }
 0x22f   :  { %4102 = vmatpush1.bf16.msra.mxu1 %v5647_v59  ;;  %4021 = vmatprep.subr.bf16.mxu0 %v5652_v60 }
 0x230   :  { %4103 = vmatprep.subr.bf16.mxu1 %v5655_v61 }
 0x232   :  { %4022 = vmatpush1.bf16.msra.mxu0 %v5650_v62  ;;  %v5710_v62 = vld [vmem:[#allocation8 + $0xbd0] ss:$68 sps:$4 sm:$0xff]  }
 0x233   :  { %4104 = vmatpush1.bf16.msra.mxu1 %v5653_v63  ;;  %4023 = vmatprep.subr.bf16.mxu0 %v5658_v0  ;;  %v5713_v63 = vld [vmem:[#allocation8 + $0xbd8] ss:$68 sps:$4 sm:$0xff]  }
 0x234   :  { %4105 = vmatprep.subr.bf16.mxu1 %v5661_v1 }
 0x236   :  { %4024 = vmatpush1.bf16.msra.mxu0 %v5656_v2 }
 0x237   :  { %4106 = vmatpush1.bf16.msra.mxu1 %v5659_v3  ;;  %4025 = vmatprep.subr.bf16.mxu0 %v5664_v4  ;;  %v5718_v4 = vld [vmem:[#allocation8 + $0xc5c] ss:$68 sps:$4 sm:$0xff]  }
 0x238   :  { %4107 = vmatprep.subr.bf16.mxu1 %v5667_v5 }
 0x23a   :  { %4026 = vmatpush1.bf16.msra.mxu0 %v5662_v6 }
 0x23b   :  { %4108 = vmatpush1.bf16.msra.mxu1 %v5665_v7  ;;  %4027 = vmatprep.subr.bf16.mxu0 %v5670_v8  ;;  %v5721_v7 = vld [vmem:[#allocation8 + $0xc64] ss:$68 sps:$4 sm:$0xff]  }
 0x23c   :  { %4109 = vmatprep.subr.bf16.mxu1 %v5673_v9 }
 0x23e   :  { %4028 = vmatpush1.bf16.msra.mxu0 %v5668_v10 }
 0x23f   :  { %4110 = vmatpush1.bf16.msra.mxu1 %v5671_v11  ;;  %4038 = vmatprep.subr.bf16.mxu0 %v5676_v12  ;;  %v5716_v12 = vld [vmem:[#allocation8 + $0xc58] ss:$68 sps:$4 sm:$0xff]  }
 0x240   :  { %4120 = vmatprep.subr.bf16.mxu1 %v5679_v13  ;;  %v5719_v13 = vld [vmem:[#allocation8 + $0xc60] ss:$68 sps:$4 sm:$0xff]  }
 0x241   :  { %4030 = vmatmul.mubr.bf16.vlgmr.msra.gmra.mrb[12].mxu0 %v6326_v40 }
 0x242   :  { %4112 = vmatmul.mubr.bf16.vlgmr.msra.gmra.mrb[12].mxu1 %v6326_v40  ;;  %4039 = vmatpush1.bf16.msra.mxu0 %v5674_v18  ;;  %v5724_v18 = vld [vmem:[#allocation8 + $0xce4] ss:$68 sps:$4 sm:$0xff]  }
 0x243   :  { %4070 = vmatprep.mubr.bf16.mxu0 %v6332_v46  ;;  %4121 = vmatpush1.bf16.msra.mxu1 %v5677_v20  ;;  %v5727_v20 = vld [vmem:[#allocation8 + $0xcec] ss:$68 sps:$4 sm:$0xff]  }
 0x244   :  { %4152 = vmatprep.mubr.bf16.mxu1 %v6332_v46  ;;  %4040 = vmatprep.subr.bf16.mxu0 %v5682_v21  ;;  %v5722_v21 = vld [vmem:[#allocation8 + $0xce0] ss:$68 sps:$4 sm:$0xff]  }
 0x245   :  { %4122 = vmatprep.subr.bf16.mxu1 %v5685_v22  ;;  %v5725_v22 = vld [vmem:[#allocation8 + $0xce8] ss:$68 sps:$4 sm:$0xff]  }
 0x246   :  { %4041 = vmatpush1.bf16.msra.mxu0 %v5680_v23  ;;  %v5730_v23 = vld [vmem:[#allocation8 + $0xd6c] ss:$68 sps:$4 sm:$0xff]  }
 0x247   :  { %4123 = vmatpush1.bf16.msra.mxu1 %v5683_v24  ;;  %4042 = vmatprep.subr.bf16.mxu0 %v5688_v25  ;;  %v5733_v24 = vld [vmem:[#allocation8 + $0xd74] ss:$68 sps:$4 sm:$0xff]   ;;  %v5728_v25 = vld [vmem:[#allocation8 + $0xd68] ss:$68 sps:$4 sm:$0xff]  }
 0x248   :  { %4124 = vmatprep.subr.bf16.mxu1 %v5691_v26  ;;  %v5731_v26 = vld [vmem:[#allocation8 + $0xd70] ss:$68 sps:$4 sm:$0xff]  }
 0x24a   :  { %4043 = vmatpush1.bf16.msra.mxu0 %v5686_v27  ;;  %v5736_v27 = vld [vmem:[#allocation8 + $0xdf4] ss:$68 sps:$4 sm:$0xff]  }
 0x24b   :  { %4125 = vmatpush1.bf16.msra.mxu1 %v5689_v28  ;;  %4044 = vmatprep.subr.bf16.mxu0 %v5694_v30  ;;  %v5739_v28 = vld [vmem:[#allocation8 + $0xdfc] ss:$68 sps:$4 sm:$0xff]  }
 0x24c   :  { %4126 = vmatprep.subr.bf16.mxu1 %v5697_v32 }
 0x24e   :  { %4045 = vmatpush1.bf16.msra.mxu0 %v5692_v33 }
 0x24f   :  { %4127 = vmatpush1.bf16.msra.mxu1 %v5695_v34  ;;  %4046 = vmatprep.subr.bf16.mxu0 %v5700_v35  ;;  %v5734_v34 = vld [vmem:[#allocation8 + $0xdf0] ss:$68 sps:$4 sm:$0xff]  }
 0x250   :  { %4128 = vmatprep.subr.bf16.mxu1 %v5703_v36 }
 0x252   :  { %4047 = vmatpush1.bf16.msra.mxu0 %v5698_v37  ;;  %v5737_v37 = vld [vmem:[#allocation8 + $0xdf8] ss:$68 sps:$4 sm:$0xff]  }
 0x253   :  { %4129 = vmatpush1.bf16.msra.mxu1 %v5701_v41  ;;  %4048 = vmatprep.subr.bf16.mxu0 %v5706_v42  ;;  %v5742_v41 = vld [vmem:[#allocation8 + $0xe7c] ss:$68 sps:$4 sm:$0xff]  }
 0x254   :  { %v3744_v29 = vpop.f32.mrb[4].mxu0  ;;  %v3826_v52 = vpop.f32.mrb[4].mxu1  ;;  %4130 = vmatprep.subr.bf16.mxu1 %v5709_v43 }
 0x255   :  { %v5123_v54 = vadd.f32 %v3744_v29, %v835_v44  ;;  %v5125_v55 = vadd.f32 %v3826_v52, %v843_v45  ;;  %v3746_v56 = vpop.f32.mrb[5].mxu0  ;;  %v3828_v57 = vpop.f32.mrb[5].mxu1  ;;  %v5745_v44 = vld [vmem:[#allocation8 + $0xe84] ss:$68 sps:$4 sm:$0xff]   ;;  %v5754_v52 = vld [vmem:[#allocation8 + $0xf8c] ss:$68 sps:$4 sm:$0xff]  }
 0x256   :  { %v5124_v58 = vadd.f32 %v3746_v56, %v839_v47  ;;  %v5126_v59 = vadd.f32 %v3828_v57, %v847_v15  ;;  %v3748_v60 = vpop.f32.mrb[6].mxu0  ;;  %v3830_v61 = vpop.f32.mrb[6].mxu1  ;;  %4049 = vmatpush1.bf16.msra.mxu0 %v5704_v48  ;;  %v5740_v47 = vld [vmem:[#allocation8 + $0xe78] ss:$68 sps:$4 sm:$0xff]   ;;  %v5743_v15 = vld [vmem:[#allocation8 + $0xe80] ss:$68 sps:$4 sm:$0xff]  }
 0x257   :  { %v4405_v0 = vsub.f32 0.0, %v5123_v54  ;;  %v4407_v1 = vsub.f32 0.0, %v5125_v55  ;;  %4131 = vmatpush1.bf16.msra.mxu1 %v5707_v49  ;;  %v3749_v2 = vpop.f32.mrb[7].mxu0  ;;  %v3831_v3 = vpop.f32.mrb[7].mxu1  ;;  %4050 = vmatprep.subr.bf16.mxu0 %v5712_v50  ;;  %v5748_v48 = vld [vmem:[#allocation8 + $0xf04] ss:$68 sps:$4 sm:$0xff]  }
 0x258   :  { %v4406_v5 = vsub.f32 0.0, %v5124_v58  ;;  %v4408_v6 = vsub.f32 0.0, %v5126_v59  ;;  %4132 = vmatprep.subr.bf16.mxu1 %v5715_v53  ;;  %v5751_v49 = vld [vmem:[#allocation8 + $0xf0c] ss:$68 sps:$4 sm:$0xff]   ;;  %v5746_v50 = vld [vmem:[#allocation8 + $0xf00] ss:$68 sps:$4 sm:$0xff]  }
 0x259   :  { %v4422_v8 = vmul.f32 1.442695, %v4405_v0  ;;  %v4426_v9 = vmul.f32 1.442695, %v4407_v1  ;;  %v5749_v29 = vld [vmem:[#allocation8 + $0xf08] ss:$68 sps:$4 sm:$0xff]  }
 0x25a   :  { %v4424_v10 = vmul.f32 1.442695, %v4406_v5  ;;  %v4428_v11 = vmul.f32 1.442695, %v4408_v6  ;;  %4051 = vmatpush1.bf16.msra.mxu0 %v5710_v62  ;;  %v5757_v53 = vld [vmem:[#allocation8 + $0xf94] ss:$68 sps:$4 sm:$0xff]  }
 0x25b   :  { %5994 = vpow2.f32 %v4422_v8  ;;  %4133 = vmatpush1.bf16.msra.mxu1 %v5713_v63  ;;  %4052 = vmatprep.subr.bf16.mxu0 %v5718_v4  ;;  %v5752_v55 = vld [vmem:[#allocation8 + $0xf88] ss:$68 sps:$4 sm:$0xff]   ;;  %v5755_v57 = vld [vmem:[#allocation8 + $0xf90] ss:$68 sps:$4 sm:$0xff]   ;;  %v5763_v60 = vld [vmem:[#allocation8 + $0x101c] ss:$68 sps:$4 sm:$0xff]  }
 0x25c   :  { %5996 = vpow2.f32 %v4426_v9  ;;  %4134 = vmatprep.subr.bf16.mxu1 %v5721_v7  ;;  %v5760_v58 = vld [vmem:[#allocation8 + $0x1014] ss:$68 sps:$4 sm:$0xff]   ;;  %v5766_v0 = vld [vmem:[#allocation8 + $0x109c] ss:$68 sps:$4 sm:$0xff]   ;;  %v5769_v1 = vld [vmem:[#allocation8 + $0x10a4] ss:$68 sps:$4 sm:$0xff]  }
 0x25d   :  { %5998 = vpow2.f32 %v4424_v10  ;;  %v5758_v62 = vld [vmem:[#allocation8 + $0x1010] ss:$68 sps:$4 sm:$0xff]   ;;  %v5761_v63 = vld [vmem:[#allocation8 + $0x1018] ss:$68 sps:$4 sm:$0xff]   ;;  %v5767_v3 = vld [vmem:[#allocation8 + $0x10a0] ss:$68 sps:$4 sm:$0xff]  }
 0x25e   :  { %6000 = vpow2.f32 %v4428_v11  ;;  %4053 = vmatpush1.bf16.msra.mxu0 %v5716_v12  ;;  %v5764_v2 = vld [vmem:[#allocation8 + $0x1098] ss:$68 sps:$4 sm:$0xff]   ;;  %v5770_v6 = vld [vmem:[#allocation8 + $0x30] ss:$68 sps:$4 sm:$0xff]   ;;  %v5781_v9 = vld [vmem:[#allocation8 + $0xc4] ss:$68 sps:$4 sm:$0xff]  }
 0x25f   :  { %4135 = vmatpush1.bf16.msra.mxu1 %v5719_v13  ;;  %4054 = vmatprep.subr.bf16.mxu0 %v5724_v18  ;;  %v5772_v4 = vld [vmem:[#allocation8 + $0x34] ss:$68 sps:$4 sm:$0xff]   ;;  %v5775_v5 = vld [vmem:[#allocation8 + $0x3c] ss:$68 sps:$4 sm:$0xff]   ;;  %v5784_v12 = vld [vmem:[#allocation8 + $0x144] ss:$68 sps:$4 sm:$0xff]  }
 0x260   :  { %4136 = vmatprep.subr.bf16.mxu1 %v5727_v20  ;;  %v5773_v7 = vld [vmem:[#allocation8 + $0x38] ss:$68 sps:$4 sm:$0xff]   ;;  %v5779_v11 = vld [vmem:[#allocation8 + $0xc0] ss:$68 sps:$4 sm:$0xff]   ;;  %v5787_v13 = vld [vmem:[#allocation8 + $0x14c] ss:$68 sps:$4 sm:$0xff]  }
 0x261   :  { %v5778_v8 = vld [vmem:[#allocation8 + $0xbc] ss:$68 sps:$4 sm:$0xff]   ;;  %v5785_v20 = vld [vmem:[#allocation8 + $0x148] ss:$68 sps:$4 sm:$0xff]  }
 0x262   :  { %4055 = vmatpush1.bf16.msra.mxu0 %v5722_v21  ;;  %v5776_v10 = vld [vmem:[#allocation8 + $0xb8] ss:$68 sps:$4 sm:$0xff]   ;;  %v5782_v18 = vld [vmem:[#allocation8 + $0x140] ss:$68 sps:$4 sm:$0xff]   ;;  %v5790_v21 = vld [vmem:[#allocation8 + $0x1cc] ss:$68 sps:$4 sm:$0xff]  }
 0x263   :  { %4137 = vmatpush1.bf16.msra.mxu1 %v5725_v22  ;;  %4056 = vmatprep.subr.bf16.mxu0 %v5730_v23  ;;  %v5793_v22 = vld [vmem:[#allocation8 + $0x1d4] ss:$68 sps:$4 sm:$0xff]   ;;  %v5788_v23 = vld [vmem:[#allocation8 + $0x1c8] ss:$68 sps:$4 sm:$0xff]  }
 0x264   :  { %4138 = vmatprep.subr.bf16.mxu1 %v5733_v24  ;;  %v5791_v24 = vld [vmem:[#allocation8 + $0x1d0] ss:$68 sps:$4 sm:$0xff]  }
 0x265   :  { %v5995_v30 = vpop.eup %5994 }
 0x266   :  { %v5997_v32 = vpop.eup %5996  ;;  %v4456_v33 = vadd.f32 1.0, %v5995_v30  ;;  %4057 = vmatpush1.bf16.msra.mxu0 %v5728_v25  ;;  %v5796_v25 = vld [vmem:[#allocation8 + $0x254] ss:$68 sps:$4 sm:$0xff]   ;;  %v5802_v30 = vld [vmem:[#allocation8 + $0x2dc] ss:$68 sps:$4 sm:$0xff]  }
 0x267   :  { %v5999_v35 = vpop.eup %5998  ;;  %v4458_v36 = vadd.f32 1.0, %v5997_v32  ;;  %4139 = vmatpush1.bf16.msra.mxu1 %v5731_v26  ;;  %4058 = vmatprep.subr.bf16.mxu0 %v5736_v27  ;;  %v5799_v26 = vld [vmem:[#allocation8 + $0x25c] ss:$68 sps:$4 sm:$0xff]   ;;  %v5794_v27 = vld [vmem:[#allocation8 + $0x250] ss:$68 sps:$4 sm:$0xff]  }
 0x268   :  { %v6001_v42 = vpop.eup %6000  ;;  %6002 = vrcp.f32 %v4456_v33  ;;  %v4457_v43 = vadd.f32 1.0, %v5999_v35  ;;  %4140 = vmatprep.subr.bf16.mxu1 %v5739_v28  ;;  %v5797_v28 = vld [vmem:[#allocation8 + $0x258] ss:$68 sps:$4 sm:$0xff]   ;;  %v5805_v32 = vld [vmem:[#allocation8 + $0x2e4] ss:$68 sps:$4 sm:$0xff]  }
 0x269   :  { %6004 = vrcp.f32 %v4458_v36  ;;  %v4459_v45 = vadd.f32 1.0, %v6001_v42  ;;  %v5800_v33 = vld [vmem:[#allocation8 + $0x2d8] ss:$68 sps:$4 sm:$0xff]   ;;  %v5808_v35 = vld [vmem:[#allocation8 + $0x364] ss:$68 sps:$4 sm:$0xff]  }
 0x26a   :  { %6006 = vrcp.f32 %v4457_v43  ;;  %4059 = vmatpush1.bf16.msra.mxu0 %v5734_v34  ;;  %v5803_v34 = vld [vmem:[#allocation8 + $0x2e0] ss:$68 sps:$4 sm:$0xff]   ;;  %v5811_v36 = vld [vmem:[#allocation8 + $0x36c] ss:$68 sps:$4 sm:$0xff]   ;;  %v5817_v43 = vld [vmem:[#allocation8 + $0x3f4] ss:$68 sps:$4 sm:$0xff]  }
 0x26b   :  { %6008 = vrcp.f32 %v4459_v45  ;;  %4141 = vmatpush1.bf16.msra.mxu1 %v5737_v37  ;;  %4060 = vmatprep.subr.bf16.mxu0 %v5742_v41  ;;  %v5806_v37 = vld [vmem:[#allocation8 + $0x360] ss:$68 sps:$4 sm:$0xff]   ;;  %v5809_v41 = vld [vmem:[#allocation8 + $0x368] ss:$68 sps:$4 sm:$0xff]   ;;  %v5815_v45 = vld [vmem:[#allocation8 + $0x3f0] ss:$68 sps:$4 sm:$0xff]  }
 0x26c   :  { %4142 = vmatprep.subr.bf16.mxu1 %v5745_v44  ;;  %v5814_v42 = vld [vmem:[#allocation8 + $0x3ec] ss:$68 sps:$4 sm:$0xff]  }
 0x26d   :  { %v5812_v44 = vld [vmem:[#allocation8 + $0x3e8] ss:$68 sps:$4 sm:$0xff]  }
 0x26e   :  { %4061 = vmatpush1.bf16.msra.mxu0 %v5740_v47  ;;  %v5820_v47 = vld [vmem:[#allocation8 + $0x474] ss:$68 sps:$4 sm:$0xff]  }
 0x26f   :  { %4143 = vmatpush1.bf16.msra.mxu1 %v5743_v15  ;;  %4062 = vmatprep.subr.bf16.mxu0 %v5748_v48  ;;  %v5823_v15 = vld [vmem:[#allocation8 + $0x47c] ss:$68 sps:$4 sm:$0xff]   ;;  %v5818_v48 = vld [vmem:[#allocation8 + $0x470] ss:$68 sps:$4 sm:$0xff]  }
 0x270   :  { %4144 = vmatprep.subr.bf16.mxu1 %v5751_v49  ;;  %v5821_v49 = vld [vmem:[#allocation8 + $0x478] ss:$68 sps:$4 sm:$0xff]  }
 0x272   :  { %v6003_v54 = vpop.eup %6002  ;;  %4063 = vmatpush1.bf16.msra.mxu0 %v5746_v50  ;;  %v5826_v50 = vld [vmem:[#allocation8 + $0x4fc] ss:$68 sps:$4 sm:$0xff]  }
 0x273   :  { %v6005_v56 = vpop.eup %6004  ;;  %4490 = vst [vmem:[#allocation11] sm:$0xff] %v6003_v54  ;;  %4145 = vmatpush1.bf16.msra.mxu1 %v5749_v29  ;;  %4064 = vmatprep.subr.bf16.mxu0 %v5754_v52  ;;  %v5829_v29 = vld [vmem:[#allocation8 + $0x504] ss:$68 sps:$4 sm:$0xff]   ;;  %v5824_v52 = vld [vmem:[#allocation8 + $0x4f8] ss:$68 sps:$4 sm:$0xff]  }
 0x274   :  { %v6007_v59 = vpop.eup %6006  ;;  %4492 = vst [vmem:[#allocation11 + $0x10] sm:$0xff] %v6005_v56  ;;  %4146 = vmatprep.subr.bf16.mxu1 %v5757_v53  ;;  %v5827_v53 = vld [vmem:[#allocation8 + $0x500] ss:$68 sps:$4 sm:$0xff]  }
 0x275   :  { %v6009_v61 = vpop.eup %6008  ;;  %4491 = vst [vmem:[#allocation11 + $0x8] sm:$0xff] %v6007_v59  ;;  %v5832_v54 = vld [vmem:[#allocation8 + $0x584] ss:$68 sps:$4 sm:$0xff]   ;;  %v5841_v59 = vld [vmem:[#allocation8 + $0x614] ss:$68 sps:$4 sm:$0xff]  }
 0x276   :  { %4493 = vst [vmem:[#allocation11 + $0x18] sm:$0xff] %v6009_v61  ;;  %4065 = vmatpush1.bf16.msra.mxu0 %v5752_v55  ;;  %v5835_v55 = vld [vmem:[#allocation8 + $0x58c] ss:$68 sps:$4 sm:$0xff]   ;;  %v5830_v56 = vld [vmem:[#allocation8 + $0x580] ss:$68 sps:$4 sm:$0xff]  }
 0x277   :  { %4147 = vmatpush1.bf16.msra.mxu1 %v5755_v57  ;;  %4066 = vmatprep.subr.bf16.mxu0 %v5760_v58  ;;  %v5833_v57 = vld [vmem:[#allocation8 + $0x588] ss:$68 sps:$4 sm:$0xff]   ;;  %v5839_v61 = vld [vmem:[#allocation8 + $0x610] ss:$68 sps:$4 sm:$0xff]  }
 0x278   :  { %4148 = vmatprep.subr.bf16.mxu1 %v5763_v60  ;;  %v5838_v58 = vld [vmem:[#allocation8 + $0x60c] ss:$68 sps:$4 sm:$0xff]  }
 0x279   :  { %v5836_v60 = vld [vmem:[#allocation8 + $0x608] ss:$68 sps:$4 sm:$0xff]  }
 0x27a   :  { %4067 = vmatpush1.bf16.msra.mxu0 %v5758_v62  ;;  %v5844_v62 = vld [vmem:[#allocation8 + $0x694] ss:$68 sps:$4 sm:$0xff]  }
 0x27b   :  { %4149 = vmatpush1.bf16.msra.mxu1 %v5761_v63  ;;  %4068 = vmatprep.subr.bf16.mxu0 %v5766_v0  ;;  %v5847_v63 = vld [vmem:[#allocation8 + $0x69c] ss:$68 sps:$4 sm:$0xff]   ;;  %v5842_v0 = vld [vmem:[#allocation8 + $0x690] ss:$68 sps:$4 sm:$0xff]  }
 0x27c   :  { %4150 = vmatprep.subr.bf16.mxu1 %v5769_v1  ;;  %v5845_v1 = vld [vmem:[#allocation8 + $0x698] ss:$68 sps:$4 sm:$0xff]  }
 0x27e   :  { %4069 = vmatpush1.bf16.msra.mxu0 %v5764_v2  ;;  %v5850_v2 = vld [vmem:[#allocation8 + $0x71c] ss:$68 sps:$4 sm:$0xff]  }
 0x27f   :  { %4151 = vmatpush1.bf16.msra.mxu1 %v5767_v3  ;;  %4161 = vmatprep.subr.bf16.mxu0 %v5772_v4  ;;  %v5853_v3 = vld [vmem:[#allocation8 + $0x724] ss:$68 sps:$4 sm:$0xff]   ;;  %v5848_v4 = vld [vmem:[#allocation8 + $0x718] ss:$68 sps:$4 sm:$0xff]  }
 0x280   :  { %4243 = vmatprep.subr.bf16.mxu1 %v5775_v5  ;;  %v5851_v5 = vld [vmem:[#allocation8 + $0x720] ss:$68 sps:$4 sm:$0xff]  }
 0x281   :  { %4071 = vmatmul.mubr.bf16.vlgmr.msra.gmra.mrb[12].mxu0 %v6342_v51 }
 0x282   :  { %4153 = vmatmul.mubr.bf16.vlgmr.msra.gmra.mrb[12].mxu1 %v6342_v51  ;;  %4162 = vmatpush1.bf16.msra.mxu0 %v5770_v6  ;;  %v5856_v6 = vld [vmem:[#allocation8 + $0x7a4] ss:$68 sps:$4 sm:$0xff]  }
 0x283   :  { %4193 = vmatprep.mubr.bf16.mxu0 %v6324_v38  ;;  %4244 = vmatpush1.bf16.msra.mxu1 %v5773_v7  ;;  %v5859_v7 = vld [vmem:[#allocation8 + $0x7ac] ss:$68 sps:$4 sm:$0xff]  }
 0x284   :  { %4275 = vmatprep.mubr.bf16.mxu1 %v6324_v38  ;;  %4163 = vmatprep.subr.bf16.mxu0 %v5778_v8  ;;  %v5854_v8 = vld [vmem:[#allocation8 + $0x7a0] ss:$68 sps:$4 sm:$0xff]  }
 0x285   :  { %4245 = vmatprep.subr.bf16.mxu1 %v5781_v9  ;;  %v5857_v9 = vld [vmem:[#allocation8 + $0x7a8] ss:$68 sps:$4 sm:$0xff]  }
 0x286   :  { %4164 = vmatpush1.bf16.msra.mxu0 %v5776_v10  ;;  %v5862_v10 = vld [vmem:[#allocation8 + $0x82c] ss:$68 sps:$4 sm:$0xff]  }
 0x287   :  { %4246 = vmatpush1.bf16.msra.mxu1 %v5779_v11  ;;  %4165 = vmatprep.subr.bf16.mxu0 %v5784_v12  ;;  %v5865_v11 = vld [vmem:[#allocation8 + $0x834] ss:$68 sps:$4 sm:$0xff]   ;;  %v5860_v12 = vld [vmem:[#allocation8 + $0x828] ss:$68 sps:$4 sm:$0xff]  }
 0x288   :  { %4247 = vmatprep.subr.bf16.mxu1 %v5787_v13  ;;  %v5863_v13 = vld [vmem:[#allocation8 + $0x830] ss:$68 sps:$4 sm:$0xff]  }
 0x28a   :  { %4166 = vmatpush1.bf16.msra.mxu0 %v5782_v18  ;;  %v5868_v18 = vld [vmem:[#allocation8 + $0x8b4] ss:$68 sps:$4 sm:$0xff]  }
 0x28b   :  { %4248 = vmatpush1.bf16.msra.mxu1 %v5785_v20  ;;  %4167 = vmatprep.subr.bf16.mxu0 %v5790_v21  ;;  %v5871_v20 = vld [vmem:[#allocation8 + $0x8bc] ss:$68 sps:$4 sm:$0xff]   ;;  %v5866_v21 = vld [vmem:[#allocation8 + $0x8b0] ss:$68 sps:$4 sm:$0xff]  }
 0x28c   :  { %4249 = vmatprep.subr.bf16.mxu1 %v5793_v22  ;;  %v5869_v22 = vld [vmem:[#allocation8 + $0x8b8] ss:$68 sps:$4 sm:$0xff]  }
 0x28e   :  { %4168 = vmatpush1.bf16.msra.mxu0 %v5788_v23  ;;  %v5874_v23 = vld [vmem:[#allocation8 + $0x93c] ss:$68 sps:$4 sm:$0xff]  }
 0x28f   :  { %4250 = vmatpush1.bf16.msra.mxu1 %v5791_v24  ;;  %4169 = vmatprep.subr.bf16.mxu0 %v5796_v25  ;;  %v5877_v24 = vld [vmem:[#allocation8 + $0x944] ss:$68 sps:$4 sm:$0xff]   ;;  %v5872_v25 = vld [vmem:[#allocation8 + $0x938] ss:$68 sps:$4 sm:$0xff]  }
 0x290   :  { %4251 = vmatprep.subr.bf16.mxu1 %v5799_v26  ;;  %v5875_v26 = vld [vmem:[#allocation8 + $0x940] ss:$68 sps:$4 sm:$0xff]  }
 0x292   :  { %4170 = vmatpush1.bf16.msra.mxu0 %v5794_v27  ;;  %v5880_v27 = vld [vmem:[#allocation8 + $0x9c4] ss:$68 sps:$4 sm:$0xff]  }
 0x293   :  { %4252 = vmatpush1.bf16.msra.mxu1 %v5797_v28  ;;  %4171 = vmatprep.subr.bf16.mxu0 %v5802_v30  ;;  %v5883_v28 = vld [vmem:[#allocation8 + $0x9cc] ss:$68 sps:$4 sm:$0xff]   ;;  %v5878_v30 = vld [vmem:[#allocation8 + $0x9c0] ss:$68 sps:$4 sm:$0xff]  }
 0x294   :  { %4253 = vmatprep.subr.bf16.mxu1 %v5805_v32  ;;  %v5881_v32 = vld [vmem:[#allocation8 + $0x9c8] ss:$68 sps:$4 sm:$0xff]  }
 0x296   :  { %4172 = vmatpush1.bf16.msra.mxu0 %v5800_v33  ;;  %v5886_v33 = vld [vmem:[#allocation8 + $0xa4c] ss:$68 sps:$4 sm:$0xff]  }
 0x297   :  { %4254 = vmatpush1.bf16.msra.mxu1 %v5803_v34  ;;  %4173 = vmatprep.subr.bf16.mxu0 %v5808_v35  ;;  %v5889_v34 = vld [vmem:[#allocation8 + $0xa54] ss:$68 sps:$4 sm:$0xff]   ;;  %v5884_v35 = vld [vmem:[#allocation8 + $0xa48] ss:$68 sps:$4 sm:$0xff]  }
 0x298   :  { %4255 = vmatprep.subr.bf16.mxu1 %v5811_v36  ;;  %v5887_v36 = vld [vmem:[#allocation8 + $0xa50] ss:$68 sps:$4 sm:$0xff]  }
 0x29a   :  { %4174 = vmatpush1.bf16.msra.mxu0 %v5806_v37  ;;  %v5892_v37 = vld [vmem:[#allocation8 + $0xad4] ss:$68 sps:$4 sm:$0xff]  }
 0x29b   :  { %4256 = vmatpush1.bf16.msra.mxu1 %v5809_v41  ;;  %4175 = vmatprep.subr.bf16.mxu0 %v5814_v42  ;;  %v5895_v41 = vld [vmem:[#allocation8 + $0xadc] ss:$68 sps:$4 sm:$0xff]   ;;  %v850_v42 = vsub.s32 4, %v6303_v14 }
 0x29c   :  { %4257 = vmatprep.subr.bf16.mxu1 %v5817_v43  ;;  %v5890_v43 = vld [vmem:[#allocation8 + $0xad0] ss:$68 sps:$4 sm:$0xff]  }
 0x29e   :  { %4176 = vmatpush1.bf16.msra.mxu0 %v5812_v44  ;;  %v858_v44 = vsub.s32 6, %v6303_v14 }
 0x29f   :  { %4258 = vmatpush1.bf16.msra.mxu1 %v5815_v45  ;;  %4177 = vmatprep.subr.bf16.mxu0 %v5820_v47  ;;  %v854_v45 = vsub.s32 5, %v6303_v14  ;;  %v5893_v47 = vld [vmem:[#allocation8 + $0xad8] ss:$68 sps:$4 sm:$0xff]  }
 0x2a0   :  { %4259 = vmatprep.subr.bf16.mxu1 %v5823_v15  ;;  %v862_v15 = vsub.s32 7, %v6303_v14 }
 0x2a2   :  { %4178 = vmatpush1.bf16.msra.mxu0 %v5818_v48  ;;  %v5898_v48 = vld [vmem:[#allocation8 + $0xb5c] ss:$68 sps:$4 sm:$0xff]  }
 0x2a3   :  { %4260 = vmatpush1.bf16.msra.mxu1 %v5821_v49  ;;  %4179 = vmatprep.subr.bf16.mxu0 %v5826_v50  ;;  %v5901_v49 = vld [vmem:[#allocation8 + $0xb64] ss:$68 sps:$4 sm:$0xff]   ;;  %v851_v50 = vrot.slane %v6360_v39, %v850_v42 }
 0x2a4   :  { %4261 = vmatprep.subr.bf16.mxu1 %v5829_v29  ;;  %v859_v29 = vrot.slane %v6360_v39, %v858_v44 }
 0x2a6   :  { %4180 = vmatpush1.bf16.msra.mxu0 %v5824_v52  ;;  %v855_v52 = vrot.slane %v6360_v39, %v854_v45 }
 0x2a7   :  { %4262 = vmatpush1.bf16.msra.mxu1 %v5827_v53  ;;  %4181 = vmatprep.subr.bf16.mxu0 %v5832_v54  ;;  %v5896_v53 = vld [vmem:[#allocation8 + $0xb58] ss:$68 sps:$4 sm:$0xff]   ;;  %v863_v54 = vrot.slane %v6360_v39, %v862_v15 }
 0x2a8   :  { %4263 = vmatprep.subr.bf16.mxu1 %v5835_v55  ;;  %v5899_v55 = vld [vmem:[#allocation8 + $0xb60] ss:$68 sps:$4 sm:$0xff]  }
 0x2aa   :  { %4182 = vmatpush1.bf16.msra.mxu0 %v5830_v56  ;;  %v5904_v56 = vld [vmem:[#allocation8 + $0xbe4] ss:$68 sps:$4 sm:$0xff]  }
 0x2ab   :  { %4264 = vmatpush1.bf16.msra.mxu1 %v5833_v57  ;;  %4183 = vmatprep.subr.bf16.mxu0 %v5838_v58  ;;  %v5907_v58 = vld [vmem:[#allocation8 + $0xbec] ss:$68 sps:$4 sm:$0xff]  }
 0x2ac   :  { %4265 = vmatprep.subr.bf16.mxu1 %v5841_v59 }
 0x2ae   :  { %4184 = vmatpush1.bf16.msra.mxu0 %v5836_v60 }
 0x2af   :  { %4266 = vmatpush1.bf16.msra.mxu1 %v5839_v61  ;;  %4185 = vmatprep.subr.bf16.mxu0 %v5844_v62 }
 0x2b0   :  { %4267 = vmatprep.subr.bf16.mxu1 %v5847_v63 }
 0x2b2   :  { %4186 = vmatpush1.bf16.msra.mxu0 %v5842_v0 }
 0x2b3   :  { %4268 = vmatpush1.bf16.msra.mxu1 %v5845_v1  ;;  %4187 = vmatprep.subr.bf16.mxu0 %v5850_v2  ;;  %v5902_v2 = vld [vmem:[#allocation8 + $0xbe0] ss:$68 sps:$4 sm:$0xff]  }
 0x2b4   :  { %4269 = vmatprep.subr.bf16.mxu1 %v5853_v3  ;;  %v5905_v3 = vld [vmem:[#allocation8 + $0xbe8] ss:$68 sps:$4 sm:$0xff]  }
 0x2b6   :  { %4188 = vmatpush1.bf16.msra.mxu0 %v5848_v4 }
 0x2b7   :  { %4270 = vmatpush1.bf16.msra.mxu1 %v5851_v5  ;;  %4189 = vmatprep.subr.bf16.mxu0 %v5856_v6 }
 0x2b8   :  { %4271 = vmatprep.subr.bf16.mxu1 %v5859_v7  ;;  %v5910_v7 = vld [vmem:[#allocation8 + $0xc6c] ss:$68 sps:$4 sm:$0xff]  }
 0x2ba   :  { %4190 = vmatpush1.bf16.msra.mxu0 %v5854_v8 }
 0x2bb   :  { %4272 = vmatpush1.bf16.msra.mxu1 %v5857_v9  ;;  %4191 = vmatprep.subr.bf16.mxu0 %v5862_v10 }
 0x2bc   :  { %4273 = vmatprep.subr.bf16.mxu1 %v5865_v11  ;;  %v5913_v11 = vld [vmem:[#allocation8 + $0xc74] ss:$68 sps:$4 sm:$0xff]  }
 0x2be   :  { %4192 = vmatpush1.bf16.msra.mxu0 %v5860_v12 }
 0x2bf   :  { %4274 = vmatpush1.bf16.msra.mxu1 %v5863_v13  ;;  %4202 = vmatprep.subr.bf16.mxu0 %v5868_v18 }
 0x2c0   :  { %4284 = vmatprep.subr.bf16.mxu1 %v5871_v20 }
 0x2c1   :  { %4194 = vmatmul.mubr.bf16.vlgmr.msra.gmra.mrb[16].mxu0 %v6326_v40 }
 0x2c2   :  { %4276 = vmatmul.mubr.bf16.vlgmr.msra.gmra.mrb[16].mxu1 %v6326_v40  ;;  %4203 = vmatpush1.bf16.msra.mxu0 %v5866_v21  ;;  %v5908_v21 = vld [vmem:[#allocation8 + $0xc68] ss:$68 sps:$4 sm:$0xff]  }
 0x2c3   :  { %4234 = vmatprep.mubr.bf16.mxu0 %v6332_v46  ;;  %4285 = vmatpush1.bf16.msra.mxu1 %v5869_v22 }
 0x2c4   :  { %4316 = vmatprep.mubr.bf16.mxu1 %v6332_v46  ;;  %4204 = vmatprep.subr.bf16.mxu0 %v5874_v23  ;;  %v5911_v23 = vld [vmem:[#allocation8 + $0xc70] ss:$68 sps:$4 sm:$0xff]  }
 0x2c5   :  { %4286 = vmatprep.subr.bf16.mxu1 %v5877_v24  ;;  %v5916_v24 = vld [vmem:[#allocation8 + $0xcf4] ss:$68 sps:$4 sm:$0xff]  }
 0x2c6   :  { %4205 = vmatpush1.bf16.msra.mxu0 %v5872_v25  ;;  %v5919_v25 = vld [vmem:[#allocation8 + $0xcfc] ss:$68 sps:$4 sm:$0xff]  }
 0x2c7   :  { %4287 = vmatpush1.bf16.msra.mxu1 %v5875_v26  ;;  %4206 = vmatprep.subr.bf16.mxu0 %v5880_v27  ;;  %v5914_v26 = vld [vmem:[#allocation8 + $0xcf0] ss:$68 sps:$4 sm:$0xff]   ;;  %v5917_v27 = vld [vmem:[#allocation8 + $0xcf8] ss:$68 sps:$4 sm:$0xff]  }
 0x2c8   :  { %4288 = vmatprep.subr.bf16.mxu1 %v5883_v28  ;;  %v5922_v28 = vld [vmem:[#allocation8 + $0xd7c] ss:$68 sps:$4 sm:$0xff]  }
 0x2ca   :  { %4207 = vmatpush1.bf16.msra.mxu0 %v5878_v30  ;;  %v5925_v30 = vld [vmem:[#allocation8 + $0xd84] ss:$68 sps:$4 sm:$0xff]  }
 0x2cb   :  { %4289 = vmatpush1.bf16.msra.mxu1 %v5881_v32  ;;  %4208 = vmatprep.subr.bf16.mxu0 %v5886_v33  ;;  %v5920_v32 = vld [vmem:[#allocation8 + $0xd78] ss:$68 sps:$4 sm:$0xff]   ;;  %v5923_v33 = vld [vmem:[#allocation8 + $0xd80] ss:$68 sps:$4 sm:$0xff]  }
 0x2cc   :  { %4290 = vmatprep.subr.bf16.mxu1 %v5889_v34  ;;  %v5928_v34 = vld [vmem:[#allocation8 + $0xe04] ss:$68 sps:$4 sm:$0xff]  }
 0x2ce   :  { %4209 = vmatpush1.bf16.msra.mxu0 %v5884_v35  ;;  %v5931_v35 = vld [vmem:[#allocation8 + $0xe0c] ss:$68 sps:$4 sm:$0xff]  }
 0x2cf   :  { %4291 = vmatpush1.bf16.msra.mxu1 %v5887_v36  ;;  %4210 = vmatprep.subr.bf16.mxu0 %v5892_v37 }
 0x2d0   :  { %4292 = vmatprep.subr.bf16.mxu1 %v5895_v41 }
 0x2d2   :  { %4211 = vmatpush1.bf16.msra.mxu0 %v5890_v43  ;;  %v5926_v43 = vld [vmem:[#allocation8 + $0xe00] ss:$68 sps:$4 sm:$0xff]  }
 0x2d3   :  { %4293 = vmatpush1.bf16.msra.mxu1 %v5893_v47  ;;  %4212 = vmatprep.subr.bf16.mxu0 %v5898_v48 }
 0x2d4   :  { %v3908_v57 = vpop.f32.mrb[8].mxu0  ;;  %4294 = vmatprep.subr.bf16.mxu1 %v5901_v49  ;;  %v5929_v49 = vld [vmem:[#allocation8 + $0xe08] ss:$68 sps:$4 sm:$0xff]  }
 0x2d5   :  { %v5127_v59 = vadd.f32 %v3908_v57, %v851_v50  ;;  %v3990_v60 = vpop.f32.mrb[8].mxu1  ;;  %v3910_v61 = vpop.f32.mrb[9].mxu0  ;;  %v5934_v50 = vld [vmem:[#allocation8 + $0xe8c] ss:$68 sps:$4 sm:$0xff]   ;;  %v5940_v57 = vld [vmem:[#allocation8 + $0xf14] ss:$68 sps:$4 sm:$0xff]  }
 0x2d6   :  { %v5129_v62 = vadd.f32 %v3990_v60, %v859_v29  ;;  %v5128_v63 = vadd.f32 %v3910_v61, %v855_v52  ;;  %v3992_v0 = vpop.f32.mrb[9].mxu1  ;;  %v3912_v1 = vpop.f32.mrb[10].mxu0  ;;  %4213 = vmatpush1.bf16.msra.mxu0 %v5896_v53  ;;  %v5937_v53 = vld [vmem:[#allocation8 + $0xe94] ss:$68 sps:$4 sm:$0xff]   ;;  %v5946_v61 = vld [vmem:[#allocation8 + $0xf9c] ss:$68 sps:$4 sm:$0xff]  }
 0x2d7   :  { %v4409_v4 = vsub.f32 0.0, %v5127_v59  ;;  %v5130_v5 = vadd.f32 %v3992_v0, %v863_v54  ;;  %v3994_v6 = vpop.f32.mrb[10].mxu1  ;;  %4295 = vmatpush1.bf16.msra.mxu1 %v5899_v55  ;;  %v3913_v39 = vpop.f32.mrb[11].mxu0  ;;  %4214 = vmatprep.subr.bf16.mxu0 %v5904_v56  ;;  %v5932_v55 = vld [vmem:[#allocation8 + $0xe88] ss:$68 sps:$4 sm:$0xff]  }
 0x2d8   :  { %v4411_v8 = vsub.f32 0.0, %v5129_v62  ;;  %v4410_v9 = vsub.f32 0.0, %v5128_v63  ;;  %v3995_v10 = vpop.f32.mrb[11].mxu1  ;;  %4296 = vmatprep.subr.bf16.mxu1 %v5907_v58  ;;  %v5935_v56 = vld [vmem:[#allocation8 + $0xe90] ss:$68 sps:$4 sm:$0xff]  }
 0x2d9   :  { %v4430_v12 = vmul.f32 1.442695, %v4409_v4  ;;  %v4412_v13 = vsub.f32 0.0, %v5130_v5  ;;  %v5943_v58 = vld [vmem:[#allocation8 + $0xf1c] ss:$68 sps:$4 sm:$0xff]  }
 0x2da   :  { %v4434_v18 = vmul.f32 1.442695, %v4411_v8  ;;  %v4432_v20 = vmul.f32 1.442695, %v4410_v9  ;;  %4215 = vmatpush1.bf16.msra.mxu0 %v5902_v2  ;;  %v5938_v59 = vld [vmem:[#allocation8 + $0xf10] ss:$68 sps:$4 sm:$0xff]  }
 0x2db   :  { %6010 = vpow2.f32 %v4430_v12  ;;  %v4436_v22 = vmul.f32 1.442695, %v4412_v13  ;;  %4297 = vmatpush1.bf16.msra.mxu1 %v5905_v3  ;;  %4216 = vmatprep.subr.bf16.mxu0 %v5910_v7  ;;  %v5941_v60 = vld [vmem:[#allocation8 + $0xf18] ss:$68 sps:$4 sm:$0xff]   ;;  %v5949_v62 = vld [vmem:[#allocation8 + $0xfa4] ss:$68 sps:$4 sm:$0xff]  }
 0x2dc   :  { %6012 = vpow2.f32 %v4434_v18  ;;  %4298 = vmatprep.subr.bf16.mxu1 %v5913_v11  ;;  %v5944_v0 = vld [vmem:[#allocation8 + $0xf98] ss:$68 sps:$4 sm:$0xff]   ;;  %v5947_v2 = vld [vmem:[#allocation8 + $0xfa0] ss:$68 sps:$4 sm:$0xff]   ;;  %v5955_v5 = vld [vmem:[#allocation8 + $0x102c] ss:$68 sps:$4 sm:$0xff]  }
 0x2dd   :  { %6014 = vpow2.f32 %v4432_v20  ;;  %v5952_v3 = vld [vmem:[#allocation8 + $0x1024] ss:$68 sps:$4 sm:$0xff]   ;;  %v5958_v8 = vld [vmem:[#allocation8 + $0x10ac] ss:$68 sps:$4 sm:$0xff]   ;;  %v5961_v9 = vld [vmem:[#allocation8 + $0x10b4] ss:$68 sps:$4 sm:$0xff]  }
 0x2de   :  { %6016 = vpow2.f32 %v4436_v22  ;;  %4217 = vmatpush1.bf16.msra.mxu0 %v5908_v21  ;;  %v5950_v39 = vld [vmem:[#allocation8 + $0x1020] ss:$68 sps:$4 sm:$0xff]   ;;  %v5953_v7 = vld [vmem:[#allocation8 + $0x1028] ss:$68 sps:$4 sm:$0xff]   ;;  %v5959_v11 = vld [vmem:[#allocation8 + $0x10b0] ss:$68 sps:$4 sm:$0xff]  }
 0x2df   :  { %4299 = vmatpush1.bf16.msra.mxu1 %v5911_v23  ;;  %4218 = vmatprep.subr.bf16.mxu0 %v5916_v24  ;;  %v5956_v10 = vld [vmem:[#allocation8 + $0x10a8] ss:$68 sps:$4 sm:$0xff]   ;;  %v5962_v12 = vld [vmem:[#allocation8 + $0x480] ss:$68 sps:$4 sm:$0xff]  }
 0x2e0   :  { %4300 = vmatprep.subr.bf16.mxu1 %v5919_v25  ;;  %v5963_v13 = vld [vmem:[#allocation8 + $0xd00] ss:$68 sps:$4 sm:$0xff]   ;;  %v5966_v21 = vld [vmem:[#allocation8 + $0x508] ss:$68 sps:$4 sm:$0xff]   ;;  %v5970_v25 = vld [vmem:[#allocation8 + $0x590] ss:$68 sps:$4 sm:$0xff]  }
 0x2e1   :  { %v5964_v18 = vld [vmem:[#allocation8 + $0x40] ss:$68 sps:$4 sm:$0xff]   ;;  %v5967_v22 = vld [vmem:[#allocation8 + $0xd88] ss:$68 sps:$4 sm:$0xff]  }
 0x2e2   :  { %4219 = vmatpush1.bf16.msra.mxu0 %v5914_v26  ;;  %v5965_v20 = vld [vmem:[#allocation8 + $0x8c0] ss:$68 sps:$4 sm:$0xff]   ;;  %v5968_v23 = vld [vmem:[#allocation8 + $0xc8] ss:$68 sps:$4 sm:$0xff]   ;;  %v5971_v26 = vld [vmem:[#allocation8 + $0xe10] ss:$68 sps:$4 sm:$0xff]  }
 0x2e3   :  { %4301 = vmatpush1.bf16.msra.mxu1 %v5917_v27  ;;  %4220 = vmatprep.subr.bf16.mxu0 %v5922_v28  ;;  %v5969_v24 = vld [vmem:[#allocation8 + $0x948] ss:$68 sps:$4 sm:$0xff]   ;;  %v5972_v27 = vld [vmem:[#allocation8 + $0x150] ss:$68 sps:$4 sm:$0xff]  }
 0x2e4   :  { %4302 = vmatprep.subr.bf16.mxu1 %v5925_v30  ;;  %v5973_v28 = vld [vmem:[#allocation8 + $0x9d0] ss:$68 sps:$4 sm:$0xff]   ;;  %v5974_v30 = vld [vmem:[#allocation8 + $0x618] ss:$68 sps:$4 sm:$0xff]  }
 0x2e5   :  { %v6011_v36 = vpop.eup %6010 }
 0x2e6   :  { %v6013_v37 = vpop.eup %6012  ;;  %v4460_v41 = vadd.f32 1.0, %v6011_v36  ;;  %4221 = vmatpush1.bf16.msra.mxu0 %v5920_v32  ;;  %v5975_v32 = vld [vmem:[#allocation8 + $0xe98] ss:$68 sps:$4 sm:$0xff]   ;;  %v5981_v36 = vld [vmem:[#allocation8 + $0xae0] ss:$68 sps:$4 sm:$0xff]  }
 0x2e7   :  { %v6015_v47 = vpop.eup %6014  ;;  %v4462_v48 = vadd.f32 1.0, %v6013_v37  ;;  %4303 = vmatpush1.bf16.msra.mxu1 %v5923_v33  ;;  %4222 = vmatprep.subr.bf16.mxu0 %v5928_v34  ;;  %v5976_v33 = vld [vmem:[#allocation8 + $0x1d8] ss:$68 sps:$4 sm:$0xff]   ;;  %v5978_v34 = vld [vmem:[#allocation8 + $0x6a0] ss:$68 sps:$4 sm:$0xff]  }
 0x2e8   :  { %v6017_v29 = vpop.eup %6016  ;;  %6018 = vrcp.f32 %v4460_v41  ;;  %v4461_v52 = vadd.f32 1.0, %v6015_v47  ;;  %4304 = vmatprep.subr.bf16.mxu1 %v5931_v35  ;;  %v5979_v35 = vld [vmem:[#allocation8 + $0xf20] ss:$68 sps:$4 sm:$0xff]   ;;  %v5982_v37 = vld [vmem:[#allocation8 + $0x728] ss:$68 sps:$4 sm:$0xff]  }
 0x2e9   :  { %6020 = vrcp.f32 %v4462_v48  ;;  %v4463_v54 = vadd.f32 1.0, %v6017_v29  ;;  %v5983_v41 = vld [vmem:[#allocation8 + $0xfa8] ss:$68 sps:$4 sm:$0xff]   ;;  %v5986_v48 = vld [vmem:[#allocation8 + $0x7b0] ss:$68 sps:$4 sm:$0xff]  }
 0x2ea   :  { %6022 = vrcp.f32 %v4461_v52  ;;  %4223 = vmatpush1.bf16.msra.mxu0 %v5926_v43  ;;  %v5984_v43 = vld [vmem:[#allocation8 + $0x2e8] ss:$68 sps:$4 sm:$0xff]   ;;  %v5989_v29 = vld [vmem:[#allocation8 + $0xbf0] ss:$68 sps:$4 sm:$0xff]   ;;  %v5990_v52 = vld [vmem:[#allocation8 + $0x838] ss:$68 sps:$4 sm:$0xff]  }
 0x2eb   :  { %6024 = vrcp.f32 %v4463_v54  ;;  %4305 = vmatpush1.bf16.msra.mxu1 %v5929_v49  ;;  %4224 = vmatprep.subr.bf16.mxu0 %v5934_v50  ;;  %v5985_v47 = vld [vmem:[#allocation8 + $0xb68] ss:$68 sps:$4 sm:$0xff]   ;;  %v5987_v49 = vld [vmem:[#allocation8 + $0x1030] ss:$68 sps:$4 sm:$0xff]   ;;  %v5992_v54 = vld [vmem:[#allocation8 + $0x3f8] ss:$68 sps:$4 sm:$0xff]  }
 0x2ec   :  { %4306 = vmatprep.subr.bf16.mxu1 %v5937_v53  ;;  %v5988_v50 = vld [vmem:[#allocation8 + $0x370] ss:$68 sps:$4 sm:$0xff]   ;;  %v5991_v53 = vld [vmem:[#allocation8 + $0x10b8] ss:$68 sps:$4 sm:$0xff]  }
 0x2ee   :  { %4225 = vmatpush1.bf16.msra.mxu0 %v5932_v55  ;;  %v5993_v55 = vld [vmem:[#allocation8 + $0xc78] ss:$68 sps:$4 sm:$0xff]  }
 0x2ef   :  { %4307 = vmatpush1.bf16.msra.mxu1 %v5935_v56  ;;  %4226 = vmatprep.subr.bf16.mxu0 %v5940_v57  ;;  %v827_v56 = vld [vmem:[#allocation10 + $0x8] sm:$0xff] }
 0x2f0   :  { %4308 = vmatprep.subr.bf16.mxu1 %v5943_v58  ;;  %v867_v57 = vrot.slane %v827_v56, %v6308_v16  ;;  %v875_v58 = vrot.slane %v827_v56, %v6337_v31 }
 0x2f2   :  { %v6019_v63 = vpop.eup %6018  ;;  %4227 = vmatpush1.bf16.msra.mxu0 %v5938_v59  ;;  %v871_v59 = vrot.slane %v827_v56, %v6311_v17 }
 0x2f3   :  { %v6021_v1 = vpop.eup %6020  ;;  %4494 = vst [vmem:[#allocation11 + $0x20] sm:$0xff] %v6019_v63  ;;  %4309 = vmatpush1.bf16.msra.mxu1 %v5941_v60  ;;  %4228 = vmatprep.subr.bf16.mxu0 %v5946_v61  ;;  %v879_v60 = vrot.slane %v827_v56, %v6316_v19 }
 0x2f4   :  { %v6023_v4 = vpop.eup %6022  ;;  %4496 = vst [vmem:[#allocation11 + $0x30] sm:$0xff] %v6021_v1  ;;  %4310 = vmatprep.subr.bf16.mxu1 %v5949_v62 }
 0x2f5   :  { %v6025_v6 = vpop.eup %6024  ;;  %4495 = vst [vmem:[#allocation11 + $0x28] sm:$0xff] %v6023_v4 }
 0x2f6   :  { %4497 = vst [vmem:[#allocation11 + $0x38] sm:$0xff] %v6025_v6  ;;  %4229 = vmatpush1.bf16.msra.mxu0 %v5944_v0 }
 0x2f7   :  { %4311 = vmatpush1.bf16.msra.mxu1 %v5947_v2  ;;  %4230 = vmatprep.subr.bf16.mxu0 %v5952_v3 }
 0x2f8   :  { %4312 = vmatprep.subr.bf16.mxu1 %v5955_v5 }
 0x2fa   :  { %4231 = vmatpush1.bf16.msra.mxu0 %v5950_v39 }
 0x2fb   :  { %4313 = vmatpush1.bf16.msra.mxu1 %v5953_v7  ;;  %4232 = vmatprep.subr.bf16.mxu0 %v5958_v8 }
 0x2fc   :  { %4314 = vmatprep.subr.bf16.mxu1 %v5961_v9 }
 0x2fe   :  { %4233 = vmatpush1.bf16.msra.mxu0 %v5956_v10 }
 0x2ff   :  { %4315 = vmatpush1.bf16.msra.mxu1 %v5959_v11  ;;  %5079 = vmatprep.subr.bf16.mxu0 %v5962_v12 }
 0x300   :  { %5101 = vmatprep.subr.bf16.mxu1 %v5963_v13 }
 0x301   :  { %4235 = vmatmul.mubr.bf16.vlgmr.msra.gmra.mrb[16].mxu0 %v6342_v51 }
 0x302   :  { %4317 = vmatmul.mubr.bf16.vlgmr.msra.gmra.mrb[16].mxu1 %v6342_v51  ;;  %5080 = vmatpush3.bf16.msra.mxu0 %v5964_v18 }
 0x303   :  { %4357 = vmatprep.mubr.bf16.mxu0 %v6324_v38  ;;  %5102 = vmatpush3.bf16.msra.mxu1 %v5965_v20  ;;  %v5977_v38 = vld [vmem:[#allocation8 + $0xa58] ss:$68 sps:$4 sm:$0xff]  }
 0x304   :  { %4397 = vmatprep.mubr.bf16.mxu1 %v6332_v46  ;;  %5081 = vmatprep.subr.bf16.mxu0 %v5966_v21  ;;  %v5980_v46 = vld [vmem:[#allocation8 + $0x260] ss:$68 sps:$4 sm:$0xff]  }
 0x305   :  { %5103 = vmatprep.subr.bf16.mxu1 %v5967_v22 }
 0x306   :  { %5082 = vmatpush3.bf16.msra.mxu0 %v5968_v23 }
 0x307   :  { %5104 = vmatpush3.bf16.msra.mxu1 %v5969_v24  ;;  %5083 = vmatprep.subr.bf16.mxu0 %v5970_v25 }
 0x308   :  { %5105 = vmatprep.subr.bf16.mxu1 %v5971_v26 }
 0x30a   :  { %5084 = vmatpush3.bf16.msra.mxu0 %v5972_v27  ;;  %v883_v27 = vrot.slane %v827_v56, %v850_v42 }
 0x30b   :  { %5106 = vmatpush3.bf16.msra.mxu1 %v5973_v28  ;;  %5085 = vmatprep.subr.bf16.mxu0 %v5974_v30  ;;  %v891_v28 = vrot.slane %v827_v56, %v858_v44  ;;  %v887_v30 = vrot.slane %v827_v56, %v854_v45 }
 0x30c   :  { %5107 = vmatprep.subr.bf16.mxu1 %v5975_v32  ;;  %v895_v32 = vrot.slane %v827_v56, %v862_v15 }
 0x30e   :  { %5086 = vmatpush3.bf16.msra.mxu0 %v5976_v33 }
 0x30f   :  { %5108 = vmatpush3.bf16.msra.mxu1 %v5977_v38  ;;  %5087 = vmatprep.subr.bf16.mxu0 %v5978_v34 }
 0x310   :  { %5109 = vmatprep.subr.bf16.mxu1 %v5979_v35 }
 0x312   :  { %5088 = vmatpush3.bf16.msra.mxu0 %v5980_v46 }
 0x313   :  { %5110 = vmatpush3.bf16.msra.mxu1 %v5981_v36  ;;  %5089 = vmatprep.subr.bf16.mxu0 %v5982_v37 }
 0x314   :  { %5111 = vmatprep.subr.bf16.mxu1 %v5983_v41 }
 0x316   :  { %5090 = vmatpush3.bf16.msra.mxu0 %v5984_v43 }
 0x317   :  { %5112 = vmatpush3.bf16.msra.mxu1 %v5985_v47  ;;  %5091 = vmatprep.subr.bf16.mxu0 %v5986_v48 }
 0x318   :  { %5113 = vmatprep.subr.bf16.mxu1 %v5987_v49 }
 0x31a   :  { %5092 = vmatpush3.bf16.msra.mxu0 %v5988_v50 }
 0x31b   :  { %5114 = vmatpush3.bf16.msra.mxu1 %v5989_v29  ;;  %5093 = vmatprep.subr.bf16.mxu0 %v5990_v52 }
 0x31c   :  { %5115 = vmatprep.subr.bf16.mxu1 %v5991_v53 }
 0x31e   :  { %5094 = vmatpush3.bf16.msra.mxu0 %v5992_v54 }
 0x31f   :  { %5116 = vmatpush3.bf16.msra.mxu1 %v5993_v55 }
 0x321   :  { %4358 = vmatmul.mubr.bf16.vlgmr.msra.gmra.mrb[20].mxu0 %v6326_v40 }
 0x322   :  { %4398 = vmatmul.mubr.bf16.vlgmr.msra.gmra.mrb[20].mxu1 %v6342_v51 }
 0x354   :  { %v4072_v61 = vpop.f32.mrb[12].mxu0 }
 0x355   :  { %v5131_v62 = vadd.f32 %v4072_v61, %v867_v57  ;;  %v4154_v63 = vpop.f32.mrb[12].mxu1  ;;  %v4074_v0 = vpop.f32.mrb[13].mxu0 }
 0x356   :  { %v5133_v1 = vadd.f32 %v4154_v63, %v875_v58  ;;  %v5132_v2 = vadd.f32 %v4074_v0, %v871_v59  ;;  %v4156_v3 = vpop.f32.mrb[13].mxu1  ;;  %v4076_v4 = vpop.f32.mrb[14].mxu0 }
 0x357   :  { %v4413_v40 = vsub.f32 0.0, %v5131_v62  ;;  %v5134_v5 = vadd.f32 %v4156_v3, %v879_v60  ;;  %v4158_v51 = vpop.f32.mrb[14].mxu1  ;;  %v4077_v6 = vpop.f32.mrb[15].mxu0  ;;  %v4534_v3 = vld [vmem:[#allocation10 + $0x10] ss:$0 sm:$0xff] }
 0x358   :  { %v4415_v39 = vsub.f32 0.0, %v5133_v1  ;;  %v4414_v16 = vsub.f32 0.0, %v5132_v2  ;;  %v4159_v7 = vpop.f32.mrb[15].mxu1 }
 0x359   :  { %v4438_v31 = vmul.f32 1.442695, %v4413_v40  ;;  %v4416_v8 = vsub.f32 0.0, %v5134_v5 }
 0x35a   :  { %v4442_v17 = vmul.f32 1.442695, %v4415_v39  ;;  %v4440_v9 = vmul.f32 1.442695, %v4414_v16 }
 0x35b   :  { %6026 = vpow2.f32 %v4438_v31  ;;  %v4444_v19 = vmul.f32 1.442695, %v4416_v8 }
 0x35c   :  { %6028 = vpow2.f32 %v4442_v17 }
 0x35d   :  { %6030 = vpow2.f32 %v4440_v9 }
 0x35e   :  { %6032 = vpow2.f32 %v4444_v19 }
 0x365   :  { %v6027_v10 = vpop.eup %6026 }
 0x366   :  { %v6029_v11 = vpop.eup %6028  ;;  %v4464_v12 = vadd.f32 1.0, %v6027_v10 }
 0x367   :  { %v6031_v13 = vpop.eup %6030  ;;  %v4466_v18 = vadd.f32 1.0, %v6029_v11 }
 0x368   :  { %v6033_v20 = vpop.eup %6032  ;;  %6034 = vrcp.f32 %v4464_v12  ;;  %v4465_v21 = vadd.f32 1.0, %v6031_v13 }
 0x369   :  { %6036 = vrcp.f32 %v4466_v18  ;;  %v4467_v22 = vadd.f32 1.0, %v6033_v20 }
 0x36a   :  { %6038 = vrcp.f32 %v4465_v21 }
 0x36b   :  { %6040 = vrcp.f32 %v4467_v22 }
 0x372   :  { %v6035_v23 = vpop.eup %6034 }
 0x373   :  { %v6037_v24 = vpop.eup %6036  ;;  %4498 = vst [vmem:[#allocation11 + $0x40] sm:$0xff] %v6035_v23 }
 0x374   :  { %v6039_v25 = vpop.eup %6038  ;;  %4500 = vst [vmem:[#allocation11 + $0x50] sm:$0xff] %v6037_v24 }
 0x375   :  { %v6041_v26 = vpop.eup %6040  ;;  %4499 = vst [vmem:[#allocation11 + $0x48] sm:$0xff] %v6039_v25 }
 0x376   :  { %4501 = vst [vmem:[#allocation11 + $0x58] sm:$0xff] %v6041_v26 }
 0x3d4   :  { %v4236_v33 = vpop.f32.mrb[16].mxu0 }
 0x3d5   :  { %v5135_v38 = vadd.f32 %v4236_v33, %v883_v27  ;;  %v4318_v34 = vpop.f32.mrb[16].mxu1  ;;  %v4238_v35 = vpop.f32.mrb[17].mxu0 }
 0x3d6   :  { %v5137_v46 = vadd.f32 %v4318_v34, %v891_v28  ;;  %v5136_v36 = vadd.f32 %v4238_v35, %v887_v30  ;;  %v4320_v37 = vpop.f32.mrb[17].mxu1  ;;  %v4240_v41 = vpop.f32.mrb[18].mxu0 }
 0x3d7   :  { %v4417_v43 = vsub.f32 0.0, %v5135_v38  ;;  %v5138_v47 = vadd.f32 %v4320_v37, %v895_v32  ;;  %v4322_v42 = vpop.f32.mrb[18].mxu1  ;;  %v4241_v48 = vpop.f32.mrb[19].mxu0 }
 0x3d8   :  { %v4419_v49 = vsub.f32 0.0, %v5137_v46  ;;  %v4418_v44 = vsub.f32 0.0, %v5136_v36  ;;  %v4323_v50 = vpop.f32.mrb[19].mxu1 }
 0x3d9   :  { %v4446_v29 = vmul.f32 1.442695, %v4417_v43  ;;  %v4420_v45 = vsub.f32 0.0, %v5138_v47 }
 0x3da   :  { %v4450_v52 = vmul.f32 1.442695, %v4419_v49  ;;  %v4448_v14 = vmul.f32 1.442695, %v4418_v44 }
 0x3db   :  { %6042 = vpow2.f32 %v4446_v29  ;;  %v4452_v15 = vmul.f32 1.442695, %v4420_v45 }
 0x3dc   :  { %6044 = vpow2.f32 %v4450_v52 }
 0x3dd   :  { %6046 = vpow2.f32 %v4448_v14 }
 0x3de   :  { %6048 = vpow2.f32 %v4452_v15 }
 0x3e5   :  { %v6043_v53 = vpop.eup %6042 }
 0x3e6   :  { %v6045_v54 = vpop.eup %6044  ;;  %v4468_v55 = vadd.f32 1.0, %v6043_v53 }
 0x3e7   :  { %v6047_v56 = vpop.eup %6046  ;;  %v4470_v57 = vadd.f32 1.0, %v6045_v54 }
 0x3e8   :  { %v6049_v58 = vpop.eup %6048  ;;  %6050 = vrcp.f32 %v4468_v55  ;;  %v4469_v59 = vadd.f32 1.0, %v6047_v56 }
 0x3e9   :  { %6052 = vrcp.f32 %v4470_v57  ;;  %v4471_v60 = vadd.f32 1.0, %v6049_v58 }
 0x3ea   :  { %6054 = vrcp.f32 %v4469_v59 }
 0x3eb   :  { %6056 = vrcp.f32 %v4471_v60 }
 0x3f2   :  { %v6051_v61 = vpop.eup %6050 }
 0x3f3   :  { %v6053_v62 = vpop.eup %6052  ;;  %4502 = vst [vmem:[#allocation11 + $0x60] sm:$0xff] %v6051_v61 }
 0x3f4   :  { %v6055_v63 = vpop.eup %6054  ;;  %4504 = vst [vmem:[#allocation11 + $0x70] sm:$0xff] %v6053_v62  ;;  %v5095_v0 = vpop.f32.mrb[20].mxu0 }
 0x3f5   :  { %v6057_v1 = vpop.eup %6056  ;;  %4503 = vst [vmem:[#allocation11 + $0x68] sm:$0xff] %v6055_v63  ;;  %v5117_v2 = vpop.f32.mrb[20].mxu1 }
 0x3f6   :  { %v5096_v4 = vpop.f32.mrb[21].mxu0  ;;  %4505 = vst [vmem:[#allocation11 + $0x78] sm:$0xff] %v6057_v1  ;;  %v5118_v5 = vpop.f32.mrb[21].mxu1 }
 0x3f7   :  { %v5097_v40 = vadd.f32 %v5096_v4, %v5095_v0  ;;  %v5098_v51 = vpop.f32.mrb[22].mxu0  ;;  %v5119_v6 = vadd.f32 %v5118_v5, %v5117_v2  ;;  %v5120_v39 = vpop.f32.mrb[22].mxu1 }
 0x3f8   :  { %v5099_v16 = vpop.f32.mrb[23].mxu0  ;;  %v5121_v31 = vpop.f32.mrb[23].mxu1 }
 0x3f9   :  { %v4360_v7 = vadd.f32 %v5097_v40, %v4534_v3 }
 0x3fb   :  { %v4400_v8 = vadd.f32 %v5119_v6, %v4360_v7 }
 0x3fd   :  { %v4421_v17 = vsub.f32 0.0, %v4400_v8 }
 0x3ff   :  { %v4454_v9 = vmul.f32 1.442695, %v4421_v17 }
 0x401   :  { %6058 = vpow2.f32 %v4454_v9 }
 0x40b   :  { %v6059_v19 = vpop.eup %6058 }
 0x40c   :  { %v4472_v10 = vadd.f32 1.0, %v6059_v19 }
 0x40e   :  { %6060 = vrcp.f32 %v4472_v10 }
 0x418   :  { %v6061_v11 = vpop.eup %6060 }
 0x419   :  { %4506 = vst [vmem:[#allocation11 + $0x80] sm:$0xff] %v6061_v11 }
 0x41a   :  { %6183 = shalt.err (!%p6180_p2)
}
 0x41b   :  { %s6184_s6 = scalar_lea.hbm %s6429_s5, 2176 }
 0x41c   :  { %p6185_p3 = scmp.ne.s32.totalorder %s6429_s5, %s6184_s6  ;;  %p6188_p4 = scmp.lt.u32.totalorder %s6184_s6, %s6429_s5 }
 0x41e   :  { %p6190_p5 = pnand %p6188_p4, %p6185_p3 }
 0x420   :  { %6193 = shalt.err (!%p6190_p5)
}
 0x421   :  { %4516 = dma.vmem_to_hbm [thread:$0]  %s4514_s28, 2176, %s6429_s5, [#allocation4]  }
 0x422   :  { %6200 = dma.done.wait [#allocation4], 2176  }
 0x423   :  { %6201 = vsyncadd [#allocation4], 4294965120 }
 0x424   :  { %4520 = vsyncpa [#allocation3], 1 }
 0x425   :  { %4521 = vsyncpa [#allocation6], 1 }
 0x426   :  { %4522 = vsyncpa [#allocation9], 1 }
 0x427   :  { %4523 = vsyncpa [#allocation4], 1 }

</bundles_post_ra>
